<compile_context>
chip_gen: v7x
topology: tpu7x:2x2x1
jax: 0.10.0
libtpu: 0.0.40
codegen_flags: <defaults>
</compile_context>

<pallas_src>
import functools

import jax
import jax.numpy as jnp
from jax.experimental import pallas as pl
from jax.experimental.pallas import tpu as pltpu


def _round_up(v, m):
    return ((v + m - 1) // m) * m


def attn_net_kernel(x_ref, w1_ref, b1_ref, w2_ref, b2_ref, a_ref, *, matvec):
    # x_ref : (TN, L) f32 (streamed)        w1_ref: (L, D) bf16 (resident)
    # b1_ref: (1, D) f32
    # w2_ref: (1, D) f32 if matvec else (D, C) bf16
    # b2_ref: (1, C) f32                    a_ref : (TN, C) f32
    x_bf = x_ref[...].astype(jnp.bfloat16)          # single HBM pass on x
    h = jnp.dot(x_bf, w1_ref[...], preferred_element_type=jnp.float32)
    h = jnp.tanh(h + b1_ref[...])
    if matvec:
        # n_classes == 1: keep the tiny second matmul off the f32 MXU path.
        a = jnp.sum(h * w2_ref[...], axis=-1, keepdims=True) + b2_ref[...]
    else:
        a = jnp.dot(h.astype(jnp.bfloat16), w2_ref[...],
                    preferred_element_type=jnp.float32) + b2_ref[...]
    a_ref[...] = a.astype(a_ref.dtype)


def attn_net_forward(x, w1, b1, w2, b2, *, tile_n=2048):
    """Pallas forward pass. Returns (A, x) exactly like the PyTorch module.

    x  : [N, L]
    w1 : [L, D]  (transposed PyTorch nn.Linear(L, D).weight)
    b1 : [D]
    w2 : [D, C]  (transposed PyTorch nn.Linear(D, C).weight)
    b2 : [C]
    """
    N, L = x.shape
    D = w1.shape[1]
    C = w2.shape[1]

    # Weights / biases are tiny and resident: one-time wrapper casts are fine.
    w1_bf = w1.astype(jnp.bfloat16)
    b1_2d = b1.reshape(1, D).astype(jnp.float32)
    b2_2d = b2.reshape(1, C).astype(jnp.float32)

    matvec = (C == 1)
    if matvec:
        w2_op = w2.reshape(1, D).astype(jnp.float32)   # lane-dense row vector
        w2_spec = pl.BlockSpec((1, D), lambda i: (0, 0))
        w2_bytes = D * 4
    else:
        w2_op = w2.astype(jnp.bfloat16)
        w2_spec = pl.BlockSpec((D, C), lambda i: (0, 0))
        w2_bytes = D * C * 2

    # Big tiles amortize the ~0.35 us/step overhead; clamp so the grid has
    # >= ~4 steps (v7x megacore occupancy + pipeline overlap).  f32 x blocks
    # need a sublane multiple of 8.
    tile_n = max(8, min(_round_up(tile_n, 8), _round_up(pl.cdiv(N, 4), 8)))
    grid_n = pl.cdiv(N, tile_n)   # no pad/slice: Pallas masks the ragged tail

    cost = pl.CostEstimate(
        flops=2 * N * L * D + 2 * N * D * C,
        transcendentals=N * D,
        bytes_accessed=(N * L * 4 + L * D * 2 + D * 4
                        + w2_bytes + C * 4 + N * C * 4),
    )

    kernel = functools.partial(attn_net_kernel, matvec=matvec)

    a = pl.pallas_call(
        kernel,
        out_shape=jax.ShapeDtypeStruct((N, C), jnp.float32),
        grid_spec=pltpu.PrefetchScalarGridSpec(
            num_scalar_prefetch=0,
            grid=(grid_n,),
            in_specs=[
                # x streamed in f32, one tile of rows per grid step.
                pl.BlockSpec((tile_n, L), lambda i: (i, 0)),
                # Weights/biases: constant block index -> stay resident
                # (Pallas skips the re-DMA when the block index is unchanged).
                pl.BlockSpec((L, D), lambda i: (0, 0)),
                pl.BlockSpec((1, D), lambda i: (0, 0)),
                w2_spec,
                pl.BlockSpec((1, C), lambda i: (0, 0)),
            ],
            out_specs=pl.BlockSpec((tile_n, C), lambda i: (i, 0)),
        ),
        compiler_params=pltpu.CompilerParams(
            # Row axis is embarrassingly parallel -> lets v7x megacore shard it.
            dimension_semantics=("parallel",),
            # Comfortable on v5e/v6e (128 MiB) and still within v7x's 64 MiB.
            vmem_limit_bytes=48 * 1024 * 1024,
        ),
        cost_estimate=cost,
    )(x, w1_bf, b1_2d, w2_op, b2_2d)

    # Module returns the attention scores and the (untouched) input features.
    return a, x


def reference_forward_bf16(x, w1, b1, w2, b2):
    # Matches the kernel's mixed precision (bf16 first matmul, f32 accumulate;
    # second op is f32 matvec for C==1, bf16 dot otherwise).
    h = jnp.dot(x.astype(jnp.bfloat16), w1.astype(jnp.bfloat16),
                preferred_element_type=jnp.float32) + b1[None, :]
    h = jnp.tanh(h)
    if w2.shape[1] == 1:
        a = h @ w2.astype(jnp.float32) + b2[None, :]
    else:
        a = jnp.dot(h.astype(jnp.bfloat16), w2.astype(jnp.bfloat16),
                    preferred_element_type=jnp.float32) + b2[None, :]
    return a, x


def reference_forward_f32(x, w1, b1, w2, b2):
    h = jnp.tanh(x @ w1 + b1[None, :])
    return h @ w2 + b2[None, :], x


if __name__ == "__main__":
    # Module defaults: L=1024, D=256, n_classes=1.  N=600 is not a multiple of
    # the tile, exercising the masked ragged-tail grid (4 steps here).
    N, L, D = 600, 1024, 256

    key = jax.random.PRNGKey(0)
    kx, kw1, kb1, kw2, kb2, kw2b, kb2b = jax.random.split(key, 7)

    x = jax.random.normal(kx, (N, L), dtype=jnp.float32)
    w1 = jax.random.normal(kw1, (L, D), dtype=jnp.float32) * 0.02
    b1 = jax.random.normal(kb1, (D,), dtype=jnp.float32) * 0.02

    # --- n_classes = 1 (module default, matvec path) ---
    C = 1
    w2 = jax.random.normal(kw2, (D, C), dtype=jnp.float32) * 0.02
    b2 = jax.random.normal(kb2, (C,), dtype=jnp.float32) * 0.02

    a, x_out = attn_net_forward(x, w1, b1, w2, b2)
    a = jax.block_until_ready(a)
    x_out = jax.block_until_ready(x_out)

    assert a.shape == (N, C)
    assert x_out.shape == (N, L)

    a_ref_bf, _ = reference_forward_bf16(x, w1, b1, w2, b2)
    assert jnp.allclose(a, a_ref_bf, atol=2e-3, rtol=2e-3)

    a_ref_f32, x_ref_f32 = reference_forward_f32(x, w1, b1, w2, b2)
    assert jnp.allclose(a, a_ref_f32, atol=3e-2, rtol=3e-2)
    assert jnp.array_equal(x_out, x_ref_f32)

    # --- n_classes = 3 (general bf16-dot path) ---
    C3 = 3
    w2b = jax.random.normal(kw2b, (D, C3), dtype=jnp.float32) * 0.02
    b2b = jax.random.normal(kb2b, (C3,), dtype=jnp.float32) * 0.02

    a3, _ = attn_net_forward(x, w1, b1, w2b, b2b)
    a3 = jax.block_until_ready(a3)
    assert a3.shape == (N, C3)

    a3_ref_bf, _ = reference_forward_bf16(x, w1, b1, w2b, b2b)
    assert jnp.allclose(a3, a3_ref_bf, atol=2e-3, rtol=2e-3)
    a3_ref_f32, _ = reference_forward_f32(x, w1, b1, w2b, b2b)
    assert jnp.allclose(a3, a3_ref_f32, atol=3e-2, rtol=3e-2)

    print("KERNEL_OK")
</pallas_src>

<mosaic_0001>
module attributes {stable_mosaic.version = 11 : i64} {
  func.func @attn_net_kernel(%arg0: i32, %arg1: memref<152x1024xf32, #tpu.memory_space<vmem>>, %arg2: memref<1024x256xbf16, #tpu.memory_space<vmem>>, %arg3: memref<1x256xf32, #tpu.memory_space<vmem>>, %arg4: memref<1x256xf32, #tpu.memory_space<vmem>>, %arg5: memref<1x1xf32, #tpu.memory_space<vmem>>, %arg6: memref<152x1xf32, #tpu.memory_space<vmem>>) attributes {dimension_semantics = [#tpu.dimension_semantics<parallel>], iteration_bounds = array<i64: 4>, scalar_prefetch = 0 : i64, scratch_operands = 0 : i64, tpu.core_type = #tpu.core_type<tc>, window_params = [{transform_indices = @transform_0, window_bounds = array<i64: 152, 1024>}, {pipeline_mode = #tpu.pipeline_mode<synchronous>, transform_indices = @transform_1, window_bounds = array<i64: 1024, 256>}, {pipeline_mode = #tpu.pipeline_mode<synchronous>, transform_indices = @transform_2, window_bounds = array<i64: 1, 256>}, {pipeline_mode = #tpu.pipeline_mode<synchronous>, transform_indices = @transform_3, window_bounds = array<i64: 1, 256>}, {pipeline_mode = #tpu.pipeline_mode<synchronous>, transform_indices = @transform_4, window_bounds = array<i64: 1, 1>}, {transform_indices = @transform_5, window_bounds = array<i64: 152, 1>}]} {
    %c0 = arith.constant 0 : index
    %c0_0 = arith.constant 0 : index
    %0 = vector.load %arg1[%c0, %c0_0] : memref<152x1024xf32, #tpu.memory_space<vmem>>, vector<152x1024xf32>
    %1 = arith.truncf %0 : vector<152x1024xf32> to vector<152x1024xbf16>
    %c0_1 = arith.constant 0 : index
    %c0_2 = arith.constant 0 : index
    %2 = vector.load %arg2[%c0_1, %c0_2] : memref<1024x256xbf16, #tpu.memory_space<vmem>>, vector<1024x256xbf16>
    %cst = arith.constant dense<0.000000e+00> : vector<152x256xf32>
    %3 = tpu.matmul %1, %2, %cst {dimension_numbers = #tpu.dot_dimension_numbers<[1], [0], [0], [1], [0, 0, 1, 1], [], []>} : vector<152x1024xbf16>, vector<1024x256xbf16>, vector<152x256xf32> -> vector<152x256xf32>
    %c0_3 = arith.constant 0 : index
    %c0_4 = arith.constant 0 : index
    %4 = vector.load %arg3[%c0_3, %c0_4] : memref<1x256xf32, #tpu.memory_space<vmem>>, vector<1x256xf32>
    %5 = vector.broadcast %4 : vector<1x256xf32> to vector<152x256xf32>
    %6 = arith.addf %3, %5 : vector<152x256xf32>
    %7 = math.tanh %6 : vector<152x256xf32>
    %c0_5 = arith.constant 0 : index
    %c0_6 = arith.constant 0 : index
    %8 = vector.load %arg4[%c0_5, %c0_6] : memref<1x256xf32, #tpu.memory_space<vmem>>, vector<1x256xf32>
    %9 = vector.broadcast %8 : vector<1x256xf32> to vector<152x256xf32>
    %10 = arith.mulf %7, %9 : vector<152x256xf32>
    %cst_7 = arith.constant dense<0.000000e+00> : vector<152xf32>
    %11 = vector.multi_reduction <add>, %10, %cst_7 [1] : vector<152x256xf32> to vector<152xf32>
    %12 = vector.shape_cast %11 : vector<152xf32> to vector<152x1xf32>
    %c0_8 = arith.constant 0 : index
    %c0_9 = arith.constant 0 : index
    %13 = vector.load %arg5[%c0_8, %c0_9] : memref<1x1xf32, #tpu.memory_space<vmem>>, vector<1x1xf32>
    %14 = vector.broadcast %13 : vector<1x1xf32> to vector<152x1xf32>
    %15 = arith.addf %12, %14 : vector<152x1xf32>
    %c0_10 = arith.constant 0 : index
    %c0_11 = arith.constant 0 : index
    %16 = vector.load %arg6[%c0_10, %c0_11] : memref<152x1xf32, #tpu.memory_space<vmem>>, vector<152x1xf32>
    tpu.vector_store %arg6[%c0_10, %c0_11], %15 {strides = array<i32>} : memref<152x1xf32, #tpu.memory_space<vmem>>, vector<152x1xf32>,
    return
  }
  func.func @transform_0(%arg0: i32) -> (i32, i32) {
    %c0_i32 = arith.constant 0 : i32
    %c0_i32_0 = arith.constant 0 : i32
    return %arg0, %c0_i32 : i32, i32
  }
  func.func @transform_1(%arg0: i32) -> (i32, i32) {
    %c0_i32 = arith.constant 0 : i32
    %c0_i32_0 = arith.constant 0 : i32
    %c0_i32_1 = arith.constant 0 : i32
    return %c0_i32, %c0_i32_0 : i32, i32
  }
  func.func @transform_2(%arg0: i32) -> (i32, i32) {
    %c0_i32 = arith.constant 0 : i32
    %c0_i32_0 = arith.constant 0 : i32
    %c0_i32_1 = arith.constant 0 : i32
    return %c0_i32, %c0_i32_0 : i32, i32
  }
  func.func @transform_3(%arg0: i32) -> (i32, i32) {
    %c0_i32 = arith.constant 0 : i32
    %c0_i32_0 = arith.constant 0 : i32
    %c0_i32_1 = arith.constant 0 : i32
    return %c0_i32, %c0_i32_0 : i32, i32
  }
  func.func @transform_4(%arg0: i32) -> (i32, i32) {
    %c0_i32 = arith.constant 0 : i32
    %c0_i32_0 = arith.constant 0 : i32
    %c0_i32_1 = arith.constant 0 : i32
    return %c0_i32, %c0_i32_0 : i32, i32
  }
  func.func @transform_5(%arg0: i32) -> (i32, i32) {
    %c0_i32 = arith.constant 0 : i32
    %c0_i32_0 = arith.constant 0 : i32
    return %arg0, %c0_i32 : i32, i32
  }
}

</mosaic_0001>

<bundles_post_ra>
// kernel: tpu_custom_call.1
= control target key start
LH: loop header
LB: loop body
LE: loop exit
PB: predicated region body
PF: predicated region fallthrough
CT: control target
= control target key end

     0   :  { %s3932_s0 = inlined_call_operand.hbm [shape: f32[600,1024], index: 0, kind: input, shape index: {}]   ;;  %s3933_s1 = inlined_call_operand.hbm [shape: bf16[1024,256], index: 1, kind: input, shape index: {}]   ;;  %s3934_s2 = inlined_call_operand.hbm [shape: f32[1,256], index: 2, kind: input, shape index: {}]   ;;  %s3935_s3 = inlined_call_operand.hbm [shape: f32[1,256], index: 3, kind: input, shape index: {}]   ;;  %s3936_s4 = inlined_call_operand.<no memory space> [shape: f32[1,1], index: 4, kind: input, shape index: {}]   ;;  %s3937_s5 = inlined_call_operand.vmem [shape: f32[600,1], index: 5, kind: output, shape index: {}]  }
   0x1   :  { %v10_v0 = vstv %s3936_s4 }
   0x2   :  { %11 = vst [vmem:[#allocation2] sm:$0x1] %v10_v0 }
   0x3   :  { %12 = vsyncpa [#allocation4], 0 }
   0x4   :  { %14 = vsyncpa [#allocation4 + $0x1], 0 }
   0x5   :  { %15 = vsyncpa [#allocation6], 0 }
   0x6   :  { %16 = vsyncpa [#allocation9], 0  ;;  %s3344_s20 = smov 0   ;;  %s3346_s21 = smov 0  }
   0x7   :  { %s3348_s22 = smov 0   ;;  %s3350_s23 = smov 0  }
   0x8 LB: > { %s3363_s4 = sadd.s32 4294967295, %s3269_s23   ;;  %s3366_s24 = sadd.s32 1, %s3269_s23   ;;  %s3269_s23 = sphi %s3350_s23, %s3961_s23   ;;  %s3265_s22 = sphi %s3348_s22, %s3960_s22   ;;  %s3261_s21 = sphi %s3346_s21, %s3959_s21   ;;  %s3257_s20 = sphi %s3344_s20, %s3958_s20  }
   0x9   : > { %s26_s25 = ssub.s32 %s3269_s23, %s3366_s24  ;;  %s29_s26 = sadd.s32 1, %s3265_s22 }
   0xa   : > { %p27_p0 = scmp.eq.s32.totalorder %s26_s25, 0  ;;  %p36_p1 = scmp.ne.s32.totalorder %s3265_s22, %s3261_s21 }
   0xb   : > { %p37_p2 = scmp.eq.s32.totalorder %s3269_s23, 0  ;;  %p42_p3 = scmp.ne.s32.totalorder %s3261_s21, %s3257_s20 }
   0xc   : > { %s3376_s27 = scalar_select %p27_p0, %s3265_s22, %s29_s26  }
   0xd   : > { %p3378_p4 = por %p37_p2, %p36_p1  ;;  %p3938_p5 = scmp.eq.s32.totalorder %s3363_s4, 0 }
   0xe   : > { %p150_p6 = scmp.eq.s32.totalorder %s3363_s4, 3  ;;  %p2357_p7 = scmp.ge.s32.totalorder %s3269_s23, 1 }
   0xf   : > { %s3941_s28 = scalar_select %p3378_p4, 1, 0 }
  0x10   : > { %p3387_p8 = por %p3938_p5, %p42_p3  ;;  %p163_p9 = scmp.lt.s32.totalorder %s3269_s23, 5 }
  0x11   : > { %p3392_p10 = por %p150_p6, %p36_p1  ;;  %s3303_s7 = smov [#allocation5]  }
  0x12   : > { %s3942_s29 = scalar_select %p3387_p8, 1, 0 }
  0x13   : > { %s3943_s30 = scalar_select %p3392_p10, 1, 0 }
  0x14   : > { %p3396_p11 = pnand %p2357_p7, %p163_p9  ;;  %s175_s8 = sshll.u32 %s3303_s7, 4  ;;  %s3402_s8 = int_to_ptr.vmem [resolvable:$true] %s175_s8 }
  0x15   : > { %s3304_s10 = smov [#allocation7]   ;;  %s3305_s12 = smov [#allocation8]  }
  0x16   : > { %s3944_s6 = scalar_select %p3396_p11, 1, 0 }
  0x17   : > { %p2691_p12 = pneg %p3396_p11  ;;  %s189_s11 = sshll.u32 %s3304_s10, 4  ;;  %s3410_s11 = int_to_ptr.vmem [resolvable:$true] %s189_s11 }
  0x18   : > { %s3412_s13 = sshll.u32 %s3305_s12, 4  ;;  %s3083_s16 = scalar_lea.hbm %s3933_s1, 16384  ;;  %s201_s13 = int_to_ptr.vmem [resolvable:$true] %s3412_s13 }
  0x19   : > { %p3406_p13 = pnand %p2691_p12, %p3938_p5  ;;  %p3084_p0 = scmp.ne.s32.totalorder %s3933_s1, %s3083_s16 }
  0x1a   : > { %p3090_p6 = scmp.lt.u32.totalorder %s3083_s16, %s3933_s1 }
  0x1b   : > { %p3422_p1 = pneg %p3406_p13 }
  0x1d   : > { %p3086_p2 = pnand %p3422_p1, %p3084_p0 }
  0x1f   : > { %p3087_p3 = pneg %p3086_p2 }
  0x21   : > { %p3092_p7 = pnand %p3090_p6, %p3087_p3 }
  0x23   : > { %3095 = shalt.err (!%p3092_p7)
}
  0x24   : > { %s3096_s26 = scalar_lea.vmem %s3402_s8, 16384  ;;  %p3104_p10 = scmp.lt.s32.totalorder %s3402_s8, %s3402_s8 }
  0x25   : > { %p3097_p9 = scmp.ne.s32.totalorder %s3402_s8, %s3096_s26  ;;  %p3105_p8 = scmp.lt.s32.totalorder %s3096_s26, %s3096_s26 }
  0x27   : > { %p3099_p12 = pnand %p3097_p9, %p3422_p1  ;;  %p3106_p0 = por %p3105_p8, %p3104_p10 }
  0x29   : > { %p3100_p5 = pneg %p3099_p12 }
  0x2b   : > { %p3107_p2 = pnand %p3106_p0, %p3100_p5 }
  0x2d   : > { %3110 = shalt.err (!%p3107_p2)
}
  0x2e   : > { %s3306_s7 = smov 128   ;;  %s3307_s10 = smov 8  }
  0x2f   : > { %2694 = dma.hbm_to_vmem [thread:$0]  (!%p3406_p13), %s3933_s1, 16384, %s3402_s8, [#allocation6], %s3306_s7, %s3306_s7, %s3307_s10  }
  0x30   : > { %s3111_s17 = scalar_lea.hbm %s3934_s2, 32 }
  0x31   : > { %p3112_p8 = scmp.ne.s32.totalorder %s3934_s2, %s3111_s17  ;;  %p3118_p3 = scmp.lt.u32.totalorder %s3111_s17, %s3934_s2 }
  0x33   : > { %p3114_p5 = pnand %p3112_p8, %p3422_p1 }
  0x35   : > { %p3115_p10 = pneg %p3114_p5 }
  0x37   : > { %p3120_p6 = pnand %p3118_p3, %p3115_p10 }
  0x39   : > { %3123 = shalt.err (!%p3120_p6)
}
  0x3a   : > { %s3124_s8 = scalar_lea.vmem %s3410_s11, 32  ;;  %p3132_p0 = scmp.lt.s32.totalorder %s3410_s11, %s3410_s11 }
  0x3b   : > { %p3125_p7 = scmp.ne.s32.totalorder %s3410_s11, %s3124_s8  ;;  %p3133_p2 = scmp.lt.s32.totalorder %s3124_s8, %s3124_s8 }
  0x3d   : > { %p3127_p9 = pnand %p3125_p7, %p3422_p1  ;;  %p3134_p8 = por %p3133_p2, %p3132_p0 }
  0x3f   : > { %p3128_p12 = pneg %p3127_p9 }
  0x41   : > { %p3135_p5 = pnand %p3134_p8, %p3128_p12 }
  0x43   : > { %3138 = shalt.err (!%p3135_p5)
}
  0x44   : > { %2697 = dma.hbm_to_vmem [thread:$0]  (!%p3406_p13), %s3934_s2, 32, %s3410_s11, [#allocation6]  }
  0x45   : > { %s3139_s15 = scalar_lea.hbm %s3935_s3, 32 }
  0x46   : > { %p3140_p10 = scmp.ne.s32.totalorder %s3935_s3, %s3139_s15  ;;  %p3146_p7 = scmp.lt.u32.totalorder %s3139_s15, %s3935_s3 }
  0x48   : > { %p3142_p3 = pnand %p3140_p10, %p3422_p1 }
  0x4a   : > { %p3143_p6 = pneg %p3142_p3 }
  0x4c   : > { %p3148_p9 = pnand %p3146_p7, %p3143_p6 }
  0x4e   : > { %3151 = shalt.err (!%p3148_p9)
}
  0x4f   : > { %s3152_s25 = scalar_lea.vmem %s201_s13, 32  ;;  %p3160_p8 = scmp.lt.s32.totalorder %s201_s13, %s201_s13 }
  0x50   : > { %p3153_p12 = scmp.ne.s32.totalorder %s201_s13, %s3152_s25  ;;  %p3161_p5 = scmp.lt.s32.totalorder %s3152_s25, %s3152_s25 }
  0x52   : > { %p3155_p0 = pnand %p3153_p12, %p3422_p1  ;;  %p3162_p11 = por %p3161_p5, %p3160_p8 }
  0x54   : > { %p3156_p2 = pneg %p3155_p0 }
  0x56   : > { %p3163_p4 = pnand %p3162_p11, %p3156_p2 }
  0x58   : > { %3166 = shalt.err (!%p3163_p4)
}
  0x59   : > { %2700 = dma.hbm_to_vmem [thread:$0]  (!%p3406_p13), %s3935_s3, 32, %s201_s13, [#allocation9]  }
  0x5a   : > { %p2361_p10 = scmp.ge.s32.totalorder %s3269_s23, 4 }
  0x5b   : > { %p3947_p3 = scmp.ne.s32.totalorder (!%p2361_p10), %s3941_s28, 0 }
  0x5c   : > { %210 = sbr.rel (%p2361_p10) target bundleno = 134 (0x86), region = 32 }
  0x63   : > { %213 = sbr.rel (!%p3947_p3) target bundleno = 134 (0x86), region = 36  ;;  %s214_s19 = sand.u32 (%p3947_p3), 1, %s3265_s22  }
  0x64   : > { %s219_s8 = smul.u32 (%p3947_p3), 19, %s3269_s23  ;;  %s3493_s14 = scalar_lea.sflag (%p3947_p3), [#allocation4], %s214_s19 }
  0x65   : > { %s2675_s7 = smul.u32 (%p3947_p3), 1216, %s214_s19 }
  0x66   : > { %s220_s10 = ssub.s32 (%p3947_p3), 75, %s219_s8 }
  0x67   : > { %p221_p11 = scmp.lt.s32.totalorder (%p3947_p3), %s220_s10, 19  ;;  %s218_s13 = scalar_lea.vmem (%p3947_p3), [#allocation3], %s2675_s7 }
  0x6a   : > { %s3963_s10 = smov (!%p221_p11, %s220_s10), 19 }
  0x6b   : > { %s3490_s12 = sshll.u32 %s3963_s10, 10 }
  0x6c   : > { %s226_s9 = ssub.s32 19456, %s3490_s12 }
  0x6d   : > { %227 = vsyncadd %s3493_s14, %s226_s9  ;;  %p2364_p4 = scmp.ne.s32.totalorder %s3490_s12, 0  ;;  %s2518_s28 = smul.u32 19456, %s3269_s23 }
  0x6e   : > { %s233_s15 = sshll.u32 %s218_s13, 4  ;;  %s3171_s23 = scalar_lea.hbm %s3932_s0, 76800  ;;  %s3503_s15 = int_to_ptr.vmem [resolvable:$true] %s233_s15 }
  0x6f   : > { %s3501_s18 = scalar_lea.hbm %s3932_s0, %s2518_s28 }
  0x70   : > { %s3167_s20 = scalar_lea.hbm %s3501_s18, %s3490_s12  ;;  %p3172_p7 = scmp.lt.u32.totalorder %s3501_s18, %s3932_s0 }
  0x71   : > { %p3168_p13 = scmp.ne.s32.totalorder %s3501_s18, %s3167_s20  ;;  %p3173_p9 = scmp.lt.u32.totalorder %s3171_s23, %s3167_s20 }
  0x72   : > { %p3175_p0 = scmp.lt.u32.totalorder %s3167_s20, %s3501_s18 }
  0x73   : > { %p3169_p1 = pnand %p3168_p13, %p2364_p4  ;;  %p3174_p12 = por %p3173_p9, %p3172_p7 }
  0x75   : > { %p3170_p6 = pneg %p3169_p1  ;;  %p3176_p2 = por %p3175_p0, %p3174_p12 }
  0x77   : > { %p3177_p8 = pnand %p3176_p2, %p3170_p6 }
  0x79   : > { %3180 = shalt.err (!%p3177_p8)
}
  0x7a   : > { %s3181_s8 = scalar_lea.vmem %s3503_s15, %s3490_s12  ;;  %s3308_s7 = smov [#allocation3]  }
  0x7b   : > { %p3182_p5 = scmp.ne.s32.totalorder %s3503_s15, %s3181_s8  ;;  %s3185_s10 = sshll.u32 %s3308_s7, 4  ;;  %s3186_s10 = int_to_ptr.vmem [resolvable:$false] %s3185_s10 }
  0x7c   : > { %s3187_s9 = scalar_lea.vmem %s3186_s10, 38912  ;;  %p3188_p11 = scmp.lt.s32.totalorder %s3503_s15, %s3186_s10 }
  0x7d   : > { %p3183_p10 = pnand %p3182_p5, %p2364_p4  ;;  %p3189_p13 = scmp.lt.s32.totalorder %s3187_s9, %s3181_s8 }
  0x7f   : > { %p3184_p3 = pneg %p3183_p10  ;;  %p3190_p1 = por %p3189_p13, %p3188_p11 }
  0x81   : > { %p3191_p7 = pnand %p3190_p1, %p3184_p3 }
  0x83   : > { %3194 = shalt.err (!%p3191_p7)
}
  0x84   : > { %s3309_s13 = smov 1024   ;;  %s3310_s28 = smov 64  }
  0x85   : > { %239 = dma.hbm_to_vmem [thread:$0]  (%p2364_p4), %s3501_s18, %s3490_s12, %s3503_s15, %s3493_s14, %s3309_s13, %s3309_s13, %s3310_s28  }
  0x86 PF: > { %p3948_p6 = scmp.ne.s32.totalorder %s3944_s6, 0 }
  0x87   : > { %s3533_s16 = sand.u32 (!%p3948_p6), 1, %s3261_s21   ;;  %p3949_p9 = scmp.ne.s32.totalorder (!%p3948_p6), %s3942_s29, 0 }
  0x88   : > { %245 = sbr.rel (%p3948_p6) target bundleno = 808 (0x328), region = 40  ;;  %s248_s20 = scalar_lea.sflag (!%p3948_p6), [#allocation4], %s3533_s16 }
  0x89   : > { %s2676_s17 = smul.u32 (!%p3948_p6), 1216, %s3533_s16 }
  0x8b   : > { %s3537_s25 = scalar_lea.vmem (!%p3948_p6), [#allocation3], %s2676_s17 }
  0x8f   : > { %3244 = dma.done.wait (%p3949_p9), %s248_s20, 19456  }
  0x90   : > { %3246 = vsyncadd (%p3949_p9), %s248_s20, 4294947840  ;;  %p3950_p4 = scmp.eq.s32.totalorder %s3363_s4, 0 }
  0x92   : > { %3248 = dma.done.wait (%p3950_p4), [#allocation6], 16416   ;;  %p3951_p12 = pmov %p3950_p4 }
  0x93   : > { %p3952_p0 = pmov %p3950_p4 }
  0x94   : > { %3250 = vsyncadd (%p3951_p12), [#allocation6], 4294950880 }
  0x95   : > { %3252 = dma.done.wait (%p3952_p0), [#allocation9], 32   ;;  %p3953_p2 = pmov %p3952_p0 }
  0x96   : > { %v2811_v1 = vld [vmem:[#allocation5 + $0x4] ss:$8 sps:$4 sm:$0xff]   ;;  %v2815_v3 = vld [vmem:[#allocation5] ss:$8 sps:$4 sm:$0xff]   ;;  %v2817_v5 = vld [vmem:[#allocation5 + $0x14] ss:$8 sps:$4 sm:$0xff]  }
  0x97   : > { %3254 = vsyncadd (%p3953_p2), [#allocation9], 4294967264  ;;  %v2813_v2 = vld [vmem:[#allocation5 + $0x204] ss:$8 sps:$4 sm:$0xff]   ;;  %1312 = vmatprep.subr.bf16.mxu1 %v2811_v1  ;;  %v2816_v4 = vld [vmem:[#allocation5 + $0x200] ss:$8 sps:$4 sm:$0xff]  }
  0x98   : > { %1574 = vmatprep.subr.bf16.mxu0 %v2813_v2  ;;  %1313 = vmatpush1.bf16.msra.mxu1 %v2815_v3  ;;  %v2819_v6 = vld [vmem:[#allocation5 + $0x214] ss:$8 sps:$4 sm:$0xff]   ;;  %v2821_v7 = vld [vmem:[#allocation5 + $0x10] ss:$8 sps:$4 sm:$0xff]   ;;  %v2823_v9 = vld [vmem:[#allocation5 + $0x24] ss:$8 sps:$4 sm:$0xff]  }
  0x99   : > { %1575 = vmatpush1.bf16.msra.mxu0 %v2816_v4  ;;  %1314 = vmatprep.subr.bf16.mxu1 %v2817_v5  ;;  %v2822_v8 = vld [vmem:[#allocation5 + $0x210] ss:$8 sps:$4 sm:$0xff]   ;;  %v2825_v10 = vld [vmem:[#allocation5 + $0x224] ss:$8 sps:$4 sm:$0xff]   ;;  %v2827_v11 = vld [vmem:[#allocation5 + $0x20] ss:$8 sps:$4 sm:$0xff]  }
  0x9a   : > { %1576 = vmatprep.subr.bf16.mxu0 %v2819_v6  ;;  %v2828_v12 = vld [vmem:[#allocation5 + $0x220] ss:$8 sps:$4 sm:$0xff]   ;;  %v2829_v13 = vld [vmem:[#allocation5 + $0x34] ss:$8 sps:$4 sm:$0xff]   ;;  %v2833_v15 = vld [vmem:[#allocation5 + $0x30] ss:$8 sps:$4 sm:$0xff]  }
  0x9b   : > { %v2831_v14 = vld [vmem:[#allocation5 + $0x234] ss:$8 sps:$4 sm:$0xff]   ;;  %v2834_v16 = vld [vmem:[#allocation5 + $0x230] ss:$8 sps:$4 sm:$0xff]   ;;  %v2835_v17 = vld [vmem:[#allocation5 + $0x44] ss:$8 sps:$4 sm:$0xff]  }
  0x9c   : > { %1315 = vmatpush1.bf16.msra.mxu1 %v2821_v7  ;;  %v2837_v18 = vld [vmem:[#allocation5 + $0x244] ss:$8 sps:$4 sm:$0xff]   ;;  %v2839_v19 = vld [vmem:[#allocation5 + $0x40] ss:$8 sps:$4 sm:$0xff]   ;;  %v2841_v21 = vld [vmem:[#allocation5 + $0x54] ss:$8 sps:$4 sm:$0xff]  }
  0x9d   : > { %1577 = vmatpush1.bf16.msra.mxu0 %v2822_v8  ;;  %1316 = vmatprep.subr.bf16.mxu1 %v2823_v9  ;;  %v2840_v20 = vld [vmem:[#allocation5 + $0x240] ss:$8 sps:$4 sm:$0xff]   ;;  %v2843_v22 = vld [vmem:[#allocation5 + $0x254] ss:$8 sps:$4 sm:$0xff]   ;;  %v2845_v23 = vld [vmem:[#allocation5 + $0x50] ss:$8 sps:$4 sm:$0xff]  }
  0x9e   : > { %1578 = vmatprep.subr.bf16.mxu0 %v2825_v10  ;;  %v2846_v24 = vld [vmem:[#allocation5 + $0x250] ss:$8 sps:$4 sm:$0xff]   ;;  %v2847_v25 = vld [vmem:[#allocation5 + $0x64] ss:$8 sps:$4 sm:$0xff]   ;;  %v2851_v27 = vld [vmem:[#allocation5 + $0x60] ss:$8 sps:$4 sm:$0xff]  }
  0x9f   : > { %v2849_v26 = vld [vmem:[#allocation5 + $0x264] ss:$8 sps:$4 sm:$0xff]   ;;  %v2852_v28 = vld [vmem:[#allocation5 + $0x260] ss:$8 sps:$4 sm:$0xff]   ;;  %v2853_v29 = vld [vmem:[#allocation5 + $0x74] ss:$8 sps:$4 sm:$0xff]  }
  0xa0   : > { %1317 = vmatpush1.bf16.msra.mxu1 %v2827_v11  ;;  %v2855_v30 = vld [vmem:[#allocation5 + $0x274] ss:$8 sps:$4 sm:$0xff]   ;;  %v2857_v31 = vld [vmem:[#allocation5 + $0x70] ss:$8 sps:$4 sm:$0xff]   ;;  %v2859_v33 = vld [vmem:[#allocation5 + $0x84] ss:$8 sps:$4 sm:$0xff]  }
  0xa1   : > { %1579 = vmatpush1.bf16.msra.mxu0 %v2828_v12  ;;  %1318 = vmatprep.subr.bf16.mxu1 %v2829_v13  ;;  %v2858_v32 = vld [vmem:[#allocation5 + $0x270] ss:$8 sps:$4 sm:$0xff]   ;;  %v2861_v34 = vld [vmem:[#allocation5 + $0x284] ss:$8 sps:$4 sm:$0xff]   ;;  %v2863_v35 = vld [vmem:[#allocation5 + $0x80] ss:$8 sps:$4 sm:$0xff]  }
  0xa2   : > { %1580 = vmatprep.subr.bf16.mxu0 %v2831_v14  ;;  %v2864_v36 = vld [vmem:[#allocation5 + $0x280] ss:$8 sps:$4 sm:$0xff]   ;;  %v2865_v37 = vld [vmem:[#allocation5 + $0x94] ss:$8 sps:$4 sm:$0xff]   ;;  %v2869_v39 = vld [vmem:[#allocation5 + $0x90] ss:$8 sps:$4 sm:$0xff]  }
  0xa3   : > { %v2867_v38 = vld [vmem:[#allocation5 + $0x294] ss:$8 sps:$4 sm:$0xff]   ;;  %v2870_v40 = vld [vmem:[#allocation5 + $0x290] ss:$8 sps:$4 sm:$0xff]   ;;  %v2871_v41 = vld [vmem:[#allocation5 + $0xa4] ss:$8 sps:$4 sm:$0xff]  }
  0xa4   : > { %1319 = vmatpush1.bf16.msra.mxu1 %v2833_v15  ;;  %v2873_v42 = vld [vmem:[#allocation5 + $0x2a4] ss:$8 sps:$4 sm:$0xff]   ;;  %v2875_v43 = vld [vmem:[#allocation5 + $0xa0] ss:$8 sps:$4 sm:$0xff]   ;;  %v2877_v45 = vld [vmem:[#allocation5 + $0xb4] ss:$8 sps:$4 sm:$0xff]  }
  0xa5   : > { %1581 = vmatpush1.bf16.msra.mxu0 %v2834_v16  ;;  %1320 = vmatprep.subr.bf16.mxu1 %v2835_v17  ;;  %v2876_v44 = vld [vmem:[#allocation5 + $0x2a0] ss:$8 sps:$4 sm:$0xff]   ;;  %v2879_v46 = vld [vmem:[#allocation5 + $0x2b4] ss:$8 sps:$4 sm:$0xff]   ;;  %v2881_v51 = vld [vmem:[#allocation5 + $0xb0] ss:$8 sps:$4 sm:$0xff]  }
  0xa6   : > { %1582 = vmatprep.subr.bf16.mxu0 %v2837_v18  ;;  %v301_v47 = vld [vmem:[%s3537_s25 + $0x8] sm:$0xff]  ;;  %v2882_v52 = vld [vmem:[#allocation5 + $0x2b0] ss:$8 sps:$4 sm:$0xff]   ;;  %v2889_v59 = vld [vmem:[#allocation5 + $0xd4] ss:$8 sps:$4 sm:$0xff]   ;;  %s2677_s29 = smul.u32 152, %s3533_s16 }
  0xa7   : > { %v309_v48 = vld [vmem:[%s3537_s25 + $0x48] sm:$0xff]  ;;  %v2891_v60 = vld [vmem:[#allocation5 + $0x2d4] ss:$8 sps:$4 sm:$0xff]   ;;  %v2893_v61 = vld [vmem:[#allocation5 + $0xd0] ss:$8 sps:$4 sm:$0xff]   ;;  %vm2007_vm0 = vcmask 7168  }
  0xa8   : > { %1321 = vmatpush1.bf16.msra.mxu1 %v2839_v19  ;;  %v305_v49 = vld [vmem:[%s3537_s25 + $0x28] sm:$0xff]  ;;  %v453_v53 = vpack.c.bf16 %v309_v48, %v301_v47  ;;  %v2894_v62 = vld [vmem:[#allocation5 + $0x2d0] ss:$8 sps:$4 sm:$0xff]   ;;  %v2901_v3 = vld [vmem:[#allocation5 + $0xf4] ss:$8 sps:$4 sm:$0xff]   ;;  %s3788_s6 = scalar_lea.vmem [#allocation10], %s2677_s29  }
  0xa9   : > { %1583 = vmatpush1.bf16.msra.mxu0 %v2840_v20  ;;  %1322 = vmatprep.subr.bf16.mxu1 %v2841_v21  ;;  %v313_v50 = vld [vmem:[%s3537_s25 + $0x68] sm:$0xff]  ;;  %v2903_v4 = vld [vmem:[#allocation5 + $0x2f4] ss:$8 sps:$4 sm:$0xff]   ;;  %v2905_v5 = vld [vmem:[#allocation5 + $0xf0] ss:$8 sps:$4 sm:$0xff]   ;;  %p3954_p8 = scmp.ne.s32.totalorder %s3943_s30, 0 }
  0xaa   : > { %1584 = vmatprep.subr.bf16.mxu0 %v2843_v22  ;;  %v457_v54 = vpack.c.bf16 %v313_v50, %v305_v49  ;;  %v2883_v55 = vld [vmem:[#allocation5 + $0xc4] ss:$8 sps:$4 sm:$0xff]   ;;  %1344 = vmatprep.mubr.bf16.mxu1 %v453_v53  ;;  %v2887_v57 = vld [vmem:[#allocation5 + $0xc0] ss:$8 sps:$4 sm:$0xff]   ;;  %v2906_v6 = vld [vmem:[#allocation5 + $0x2f0] ss:$8 sps:$4 sm:$0xff]  }
  0xab   : > { %v2885_v56 = vld [vmem:[#allocation5 + $0x2c4] ss:$8 sps:$4 sm:$0xff]   ;;  %v2888_v58 = vld [vmem:[#allocation5 + $0x2c0] ss:$8 sps:$4 sm:$0xff]   ;;  %v2915_v21 = vld [vmem:[#allocation5 + $0x114] ss:$8 sps:$4 sm:$0xff]  }
  0xac   : > { %1323 = vmatpush1.bf16.msra.mxu1 %v2845_v23  ;;  %1606 = vmatprep.mubr.bf16.mxu0 %v457_v54  ;;  %v2895_v63 = vld [vmem:[#allocation5 + $0xe4] ss:$8 sps:$4 sm:$0xff]   ;;  %v2899_v1 = vld [vmem:[#allocation5 + $0xe0] ss:$8 sps:$4 sm:$0xff]   ;;  %v2918_v23 = vld [vmem:[#allocation5 + $0x314] ss:$8 sps:$4 sm:$0xff]  }
  0xad   : > { %1585 = vmatpush1.bf16.msra.mxu0 %v2846_v24  ;;  %1324 = vmatprep.subr.bf16.mxu1 %v2847_v25  ;;  %v2897_v0 = vld [vmem:[#allocation5 + $0x2e4] ss:$8 sps:$4 sm:$0xff]   ;;  %v2900_v2 = vld [vmem:[#allocation5 + $0x2e0] ss:$8 sps:$4 sm:$0xff]   ;;  %v2913_v24 = vld [vmem:[#allocation5 + $0x110] ss:$8 sps:$4 sm:$0xff]  }
  0xae   : > { %1586 = vmatprep.subr.bf16.mxu0 %v2849_v26  ;;  %v300_v7 = vld [vmem:[%s3537_s25] sm:$0xff]  ;;  %v317_v13 = vld [vmem:[%s3537_s25 + $0x88] sm:$0xff]  ;;  %v2916_v26 = vld [vmem:[#allocation5 + $0x310] ss:$8 sps:$4 sm:$0xff]   ;;  %s2034_s12 = smul.u32 (%p3954_p8), 19, %s3363_s4 }
  0xaf   : > { %v308_v8 = vld [vmem:[%s3537_s25 + $0x40] sm:$0xff]  ;;  %v325_v14 = vld [vmem:[%s3537_s25 + $0xc8] sm:$0xff]  ;;  %v2930_v48 = vld [vmem:[#allocation5 + $0x334] ss:$8 sps:$4 sm:$0xff]   ;;  %s2517_s14 = smul.u32 (%p3954_p8), 152, %s3363_s4 }
  0xb0   : > { %1325 = vmatpush1.bf16.msra.mxu1 %v2851_v27  ;;  %v2909_v9 = vld [vmem:[#allocation5 + $0x104] ss:$8 sps:$4 sm:$0xff]   ;;  %v452_v15 = vpack.c.bf16 %v308_v8, %v300_v7  ;;  %v2907_v19 = vld [vmem:[#allocation5 + $0x100] ss:$8 sps:$4 sm:$0xff]   ;;  %v461_v22 = vpack.c.bf16 %v325_v14, %v317_v13  ;;  %v2928_v50 = vld [vmem:[#allocation5 + $0x330] ss:$8 sps:$4 sm:$0xff]  }
  0xb1   : > { %1587 = vmatpush1.bf16.msra.mxu0 %v2852_v28  ;;  %1326 = vmatprep.subr.bf16.mxu1 %v2853_v29  ;;  %v304_v10 = vld [vmem:[%s3537_s25 + $0x20] sm:$0xff]  ;;  %v321_v17 = vld [vmem:[%s3537_s25 + $0xa8] sm:$0xff]  ;;  %s2035_s15 = ssub.s32 (%p3954_p8), 75, %s2034_s12  ;;  %s3835_s23 = scalar_lea.vmem (%p3954_p8), %s3937_s5, %s2517_s14  }
  0xb2   : > { %1588 = vmatprep.subr.bf16.mxu0 %v2855_v30  ;;  %v312_v11 = vld [vmem:[%s3537_s25 + $0x60] sm:$0xff]  ;;  %v329_v18 = vld [vmem:[%s3537_s25 + $0xe8] sm:$0xff]  ;;  %p2036_p5 = scmp.lt.s32.totalorder (%p3954_p8), %s2035_s15, 19 }
  0xb3   : > { %v2912_v12 = vld [vmem:[#allocation5 + $0x304] ss:$8 sps:$4 sm:$0xff]   ;;  %v456_v16 = vpack.c.bf16 %v312_v11, %v304_v10  ;;  %v2910_v20 = vld [vmem:[#allocation5 + $0x300] ss:$8 sps:$4 sm:$0xff]   ;;  %v465_v25 = vpack.c.bf16 %v329_v18, %v321_v17 }
  0xb4   : > { %1327 = vmatpush1.bf16.msra.mxu1 %v2857_v31  ;;  %v316_v27 = vld [vmem:[%s3537_s25 + $0x80] sm:$0xff]  ;;  %v349_v53 = vld [vmem:[%s3537_s25 + $0x188] sm:$0xff] }
  0xb5   : > { %1589 = vmatpush1.bf16.msra.mxu0 %v2858_v32  ;;  %1328 = vmatprep.subr.bf16.mxu1 %v2859_v33  ;;  %v324_v28 = vld [vmem:[%s3537_s25 + $0xc0] sm:$0xff]  ;;  %v333_v33 = vld [vmem:[%s3537_s25 + $0x108] sm:$0xff] }
  0xb6   : > { %1590 = vmatprep.subr.bf16.mxu0 %v2861_v34  ;;  %v320_v29 = vld [vmem:[%s3537_s25 + $0xa0] sm:$0xff]  ;;  %v341_v34 = vld [vmem:[%s3537_s25 + $0x148] sm:$0xff] }
  0xb7   : > { %v328_v30 = vld [vmem:[%s3537_s25 + $0xe0] sm:$0xff]  ;;  %v357_v54 = vld [vmem:[%s3537_s25 + $0x1c8] sm:$0xff] }
  0xb8   : > { %1329 = vmatpush1.bf16.msra.mxu1 %v2863_v35  ;;  %v2921_v31 = vld [vmem:[#allocation5 + $0x124] ss:$8 sps:$4 sm:$0xff]   ;;  %v460_v35 = vpack.c.bf16 %v324_v28, %v316_v27  ;;  %v2946_v18 = vld [vmem:[#allocation5 + $0x360] ss:$8 sps:$4 sm:$0xff]  }
  0xb9   : > { %1591 = vmatpush1.bf16.msra.mxu0 %v2864_v36  ;;  %1330 = vmatprep.subr.bf16.mxu1 %v2865_v37  ;;  %v2924_v32 = vld [vmem:[#allocation5 + $0x324] ss:$8 sps:$4 sm:$0xff]   ;;  %v464_v36 = vpack.c.bf16 %v328_v30, %v320_v29 }
  0xba   : > { %1592 = vmatprep.subr.bf16.mxu0 %v2867_v38  ;;  %v337_v37 = vld [vmem:[%s3537_s25 + $0x128] sm:$0xff]  ;;  %v336_v47 = vld [vmem:[%s3537_s25 + $0x120] sm:$0xff] }
  0xbb   : > { %v345_v38 = vld [vmem:[%s3537_s25 + $0x168] sm:$0xff]  ;;  %v344_v49 = vld [vmem:[%s3537_s25 + $0x160] sm:$0xff] }
  0xbc   : > { %1331 = vmatpush1.bf16.msra.mxu1 %v2869_v39  ;;  %v2919_v39 = vld [vmem:[#allocation5 + $0x120] ss:$8 sps:$4 sm:$0xff]   ;;  %v2945_v7 = vld [vmem:[#allocation5 + $0x164] ss:$8 sps:$4 sm:$0xff]  }
  0xbd   : > { %1593 = vmatpush1.bf16.msra.mxu0 %v2870_v40  ;;  %1332 = vmatprep.subr.bf16.mxu1 %v2871_v41  ;;  %v2922_v40 = vld [vmem:[#allocation5 + $0x320] ss:$8 sps:$4 sm:$0xff]   ;;  %v469_v41 = vpack.c.bf16 %v341_v34, %v333_v33 }
  0xbe   : > { %1594 = vmatprep.subr.bf16.mxu0 %v2873_v42  ;;  %v2927_v42 = vld [vmem:[#allocation5 + $0x134] ss:$8 sps:$4 sm:$0xff]   ;;  %v365_v8 = vld [vmem:[%s3537_s25 + $0x208] sm:$0xff] }
  0xbf   : > { %v369_v10 = vld [vmem:[%s3537_s25 + $0x228] sm:$0xff] }
  0xc0   : > { %1333 = vmatpush1.bf16.msra.mxu1 %v2875_v43  ;;  %v2925_v43 = vld [vmem:[#allocation5 + $0x130] ss:$8 sps:$4 sm:$0xff]   ;;  %v377_v11 = vld [vmem:[%s3537_s25 + $0x268] sm:$0xff] }
  0xc1   : > { %1595 = vmatpush1.bf16.msra.mxu0 %v2876_v44  ;;  %1334 = vmatprep.subr.bf16.mxu1 %v2877_v45  ;;  %v473_v44 = vpack.c.bf16 %v345_v38, %v337_v37  ;;  %v332_v45 = vld [vmem:[%s3537_s25 + $0x100] sm:$0xff]  ;;  %v489_v17 = vpack.c.bf16 %v377_v11, %v369_v10  ;;  %v381_v27 = vld [vmem:[%s3537_s25 + $0x288] sm:$0xff] }
  0xc2   : > { %1596 = vmatprep.subr.bf16.mxu0 %v2879_v46  ;;  %v340_v46 = vld [vmem:[%s3537_s25 + $0x140] sm:$0xff]  ;;  %v389_v28 = vld [vmem:[%s3537_s25 + $0x2c8] sm:$0xff] }
  0xc3   : > { %v385_v29 = vld [vmem:[%s3537_s25 + $0x2a8] sm:$0xff] }
  0xc4   : > { %1335 = vmatpush1.bf16.msra.mxu1 %v2881_v51  ;;  %v2933_v51 = vld [vmem:[#allocation5 + $0x144] ss:$8 sps:$4 sm:$0xff]   ;;  %v2955_v37 = vld [vmem:[#allocation5 + $0x180] ss:$8 sps:$4 sm:$0xff]  }
  0xc5   : > { %1597 = vmatpush1.bf16.msra.mxu0 %v2882_v52  ;;  %1336 = vmatprep.subr.bf16.mxu1 %v2883_v55  ;;  %v2936_v52 = vld [vmem:[#allocation5 + $0x344] ss:$8 sps:$4 sm:$0xff]   ;;  %v2958_v38 = vld [vmem:[#allocation5 + $0x380] ss:$8 sps:$4 sm:$0xff]  }
  0xc6   : > { %1598 = vmatprep.subr.bf16.mxu0 %v2885_v56  ;;  %v353_v55 = vld [vmem:[%s3537_s25 + $0x1a8] sm:$0xff] }
  0xc7   : > { %v361_v56 = vld [vmem:[%s3537_s25 + $0x1e8] sm:$0xff] }
  0xc8   : > { %1337 = vmatpush1.bf16.msra.mxu1 %v2887_v57  ;;  %v468_v57 = vpack.c.bf16 %v340_v46, %v332_v45  ;;  %v393_v30 = vld [vmem:[%s3537_s25 + $0x2e8] sm:$0xff]  ;;  %v2961_v45 = vld [vmem:[#allocation5 + $0x190] ss:$8 sps:$4 sm:$0xff]  }
  0xc9   : > { %1599 = vmatpush1.bf16.msra.mxu0 %v2888_v58  ;;  %1338 = vmatprep.subr.bf16.mxu1 %v2889_v59  ;;  %v472_v58 = vpack.c.bf16 %v344_v49, %v336_v47  ;;  %v2931_v59 = vld [vmem:[#allocation5 + $0x140] ss:$8 sps:$4 sm:$0xff]  }
  0xca   : > { %1600 = vmatprep.subr.bf16.mxu0 %v2891_v60  ;;  %v477_v60 = vpack.c.bf16 %v357_v54, %v349_v53  ;;  %v397_v46 = vld [vmem:[%s3537_s25 + $0x308] sm:$0xff] }
  0xcb   : > { %v405_v47 = vld [vmem:[%s3537_s25 + $0x348] sm:$0xff] }
  0xcc   : > { %1339 = vmatpush1.bf16.msra.mxu1 %v2893_v61  ;;  %v2934_v61 = vld [vmem:[#allocation5 + $0x340] ss:$8 sps:$4 sm:$0xff]  }
  0xcd   : > { %1601 = vmatpush1.bf16.msra.mxu0 %v2894_v62  ;;  %1340 = vmatprep.subr.bf16.mxu1 %v2895_v63  ;;  %v481_v62 = vpack.c.bf16 %v361_v56, %v353_v55  ;;  %v348_v63 = vld [vmem:[%s3537_s25 + $0x180] sm:$0xff]  ;;  %v409_v49 = vld [vmem:[%s3537_s25 + $0x368] sm:$0xff]  ;;  %v501_v55 = vpack.c.bf16 %v405_v47, %v397_v46 }
  0xce   : > { %1602 = vmatprep.subr.bf16.mxu0 %v2897_v0  ;;  %v356_v0 = vld [vmem:[%s3537_s25 + $0x1c0] sm:$0xff] }
  0xcf   : > { %v476_v13 = vpack.c.bf16 %v356_v0, %v348_v63  ;;  %v2975_v63 = vld [vmem:[#allocation5 + $0x1b4] ss:$8 sps:$4 sm:$0xff]  }
  0xd0   : > { %1341 = vmatpush1.bf16.msra.mxu1 %v2899_v1  ;;  %v352_v1 = vld [vmem:[%s3537_s25 + $0x1a0] sm:$0xff]  ;;  %v2978_v0 = vld [vmem:[#allocation5 + $0x3b4] ss:$8 sps:$4 sm:$0xff]  }
  0xd1   : > { %1603 = vmatpush1.bf16.msra.mxu0 %v2900_v2  ;;  %1342 = vmatprep.subr.bf16.mxu1 %v2901_v3  ;;  %v2939_v2 = vld [vmem:[#allocation5 + $0x154] ss:$8 sps:$4 sm:$0xff]  }
  0xd2   : > { %1604 = vmatprep.subr.bf16.mxu0 %v2903_v4  ;;  %v2942_v3 = vld [vmem:[#allocation5 + $0x354] ss:$8 sps:$4 sm:$0xff]   ;;  %v360_v4 = vld [vmem:[%s3537_s25 + $0x1e0] sm:$0xff] }
  0xd3   : > { %v480_v14 = vpack.c.bf16 %v360_v4, %v352_v1  ;;  %v413_v1 = vld [vmem:[%s3537_s25 + $0x388] sm:$0xff] }
  0xd4   : > { %1343 = vmatpush1.bf16.msra.mxu1 %v2905_v5  ;;  %v2937_v5 = vld [vmem:[#allocation5 + $0x150] ss:$8 sps:$4 sm:$0xff]   ;;  %v417_v4 = vld [vmem:[%s3537_s25 + $0x3a8] sm:$0xff] }
  0xd5   : > { %1605 = vmatpush1.bf16.msra.mxu0 %v2906_v6  ;;  %1443 = vmatprep.subr.bf16.mxu1 %v2909_v9  ;;  %v2940_v6 = vld [vmem:[#allocation5 + $0x350] ss:$8 sps:$4 sm:$0xff]   ;;  %v373_v9 = vld [vmem:[%s3537_s25 + $0x248] sm:$0xff] }
  0xd6   : > { %1705 = vmatprep.subr.bf16.mxu0 %v2912_v12  ;;  %v2948_v12 = vld [vmem:[#allocation5 + $0x364] ss:$8 sps:$4 sm:$0xff]  }
  0xd7   : > { %1345 = vmatmul.mubr.bf16.vlgmr.msra.gmra.mrb[0].mxu1 %v452_v15  ;;  %v2943_v15 = vld [vmem:[#allocation5 + $0x160] ss:$8 sps:$4 sm:$0xff]  }
  0xd8   : > { %1607 = vmatmul.mubr.bf16.vlgmr.msra.gmra.mrb[0].mxu0 %v456_v16  ;;  %1444 = vmatpush1.bf16.msra.mxu1 %v2907_v19  ;;  %v485_v16 = vpack.c.bf16 %v373_v9, %v365_v8  ;;  %v364_v19 = vld [vmem:[%s3537_s25 + $0x200] sm:$0xff] }
  0xd9   : > { %1706 = vmatpush1.bf16.msra.mxu0 %v2910_v20  ;;  %1445 = vmatprep.subr.bf16.mxu1 %v2915_v21  ;;  %v372_v20 = vld [vmem:[%s3537_s25 + $0x240] sm:$0xff] }
  0xda   : > { %1354 = vmatprep.mubr.bf16.mxu1 %v461_v22  ;;  %1616 = vmatprep.mubr.bf16.mxu0 %v465_v25  ;;  %v368_v21 = vld [vmem:[%s3537_s25 + $0x220] sm:$0xff]  ;;  %v2949_v25 = vld [vmem:[#allocation5 + $0x170] ss:$8 sps:$4 sm:$0xff]   ;;  %v484_v33 = vpack.c.bf16 %v372_v20, %v364_v19 }
  0xdb   : > { %1707 = vmatprep.subr.bf16.mxu0 %v2918_v23  ;;  %v376_v22 = vld [vmem:[%s3537_s25 + $0x260] sm:$0xff]  ;;  %v2951_v23 = vld [vmem:[#allocation5 + $0x174] ss:$8 sps:$4 sm:$0xff]  }
  0xdc   : > { %1446 = vmatpush1.bf16.msra.mxu1 %v2913_v24  ;;  %v2954_v24 = vld [vmem:[#allocation5 + $0x374] ss:$8 sps:$4 sm:$0xff]   ;;  %v488_v34 = vpack.c.bf16 %v376_v22, %v368_v21  ;;  %v2984_v8 = vld [vmem:[#allocation5 + $0x3c4] ss:$8 sps:$4 sm:$0xff]  }
  0xdd   : > { %1708 = vmatpush1.bf16.msra.mxu0 %v2916_v26  ;;  %1447 = vmatprep.subr.bf16.mxu1 %v2921_v31  ;;  %v2952_v26 = vld [vmem:[#allocation5 + $0x370] ss:$8 sps:$4 sm:$0xff]   ;;  %v2957_v31 = vld [vmem:[#allocation5 + $0x184] ss:$8 sps:$4 sm:$0xff]  }
  0xde   : > { %1709 = vmatprep.subr.bf16.mxu0 %v2924_v32  ;;  %v2960_v32 = vld [vmem:[#allocation5 + $0x384] ss:$8 sps:$4 sm:$0xff]  }
  0xdf   : > { %1355 = vmatmul.mubr.bf16.gmra.mrb[4].mxu1 %v460_v35  ;;  %v493_v35 = vpack.c.bf16 %v389_v28, %v381_v27  ;;  %v416_v19 = vld [vmem:[%s3537_s25 + $0x3a0] sm:$0xff]  ;;  %v429_v21 = vld [vmem:[%s3537_s25 + $0x408] sm:$0xff] }
  0xe0   : > { %1617 = vmatmul.mubr.bf16.gmra.mrb[4].mxu0 %v464_v36  ;;  %1448 = vmatpush1.bf16.msra.mxu1 %v2919_v39  ;;  %v497_v36 = vpack.c.bf16 %v393_v30, %v385_v29  ;;  %v380_v39 = vld [vmem:[%s3537_s25 + $0x280] sm:$0xff]  ;;  %v437_v22 = vld [vmem:[%s3537_s25 + $0x448] sm:$0xff] }
  0xe1   : > { %1710 = vmatpush1.bf16.msra.mxu0 %v2922_v40  ;;  %1364 = vmatprep.mubr.bf16.mxu1 %v469_v41  ;;  %v388_v40 = vld [vmem:[%s3537_s25 + $0x2c0] sm:$0xff] }
  0xe2   : > { %1449 = vmatprep.subr.bf16.mxu1 %v2927_v42  ;;  %1626 = vmatprep.mubr.bf16.mxu0 %v473_v44  ;;  %v384_v41 = vld [vmem:[%s3537_s25 + $0x2a0] sm:$0xff]  ;;  %v2963_v42 = vld [vmem:[#allocation5 + $0x194] ss:$8 sps:$4 sm:$0xff]   ;;  %v492_v53 = vpack.c.bf16 %v388_v40, %v380_v39 }
  0xe3   : > { %1711 = vmatprep.subr.bf16.mxu0 %v2930_v48  ;;  %v392_v44 = vld [vmem:[%s3537_s25 + $0x2e0] sm:$0xff]  ;;  %v401_v48 = vld [vmem:[%s3537_s25 + $0x328] sm:$0xff] }
  0xe4   : > { %1450 = vmatpush1.bf16.msra.mxu1 %v2925_v43  ;;  %v2966_v43 = vld [vmem:[#allocation5 + $0x394] ss:$8 sps:$4 sm:$0xff]   ;;  %v496_v54 = vpack.c.bf16 %v392_v44, %v384_v41  ;;  %v505_v56 = vpack.c.bf16 %v409_v49, %v401_v48  ;;  %v424_v20 = vld [vmem:[%s3537_s25 + $0x3e0] sm:$0xff]  ;;  %v445_v41 = vld [vmem:[%s3537_s25 + $0x488] sm:$0xff] }
  0xe5   : > { %1712 = vmatpush1.bf16.msra.mxu0 %v2928_v50  ;;  %1451 = vmatprep.subr.bf16.mxu1 %v2933_v51  ;;  %v2964_v50 = vld [vmem:[#allocation5 + $0x390] ss:$8 sps:$4 sm:$0xff]   ;;  %v2969_v51 = vld [vmem:[#allocation5 + $0x1a4] ss:$8 sps:$4 sm:$0xff]   ;;  %v512_v30 = vpack.c.bf16 %v424_v20, %v416_v19  ;;  %v525_v47 = vpack.c.bf16 %v445_v41, %v445_v41 }
  0xe6   : > { %1713 = vmatprep.subr.bf16.mxu0 %v2936_v52  ;;  %v2972_v52 = vld [vmem:[#allocation5 + $0x3a4] ss:$8 sps:$4 sm:$0xff]   ;;  %v3000_v44 = vld [vmem:[#allocation5 + $0x3f0] ss:$8 sps:$4 sm:$0xff]  }
  0xe7   : > { %1365 = vmatmul.mubr.bf16.gmra.mrb[8].mxu1 %v468_v57  ;;  %v2967_v57 = vld [vmem:[#allocation5 + $0x1a0] ss:$8 sps:$4 sm:$0xff]   ;;  %v2993_v27 = vld [vmem:[#allocation5 + $0x1e4] ss:$8 sps:$4 sm:$0xff]   ;;  %v334_v19 = vld [vmem:[%s3537_s25 + $0x110] sm:$0xff] }
  0xe8   : > { %1627 = vmatmul.mubr.bf16.gmra.mrb[8].mxu0 %v472_v58  ;;  %1452 = vmatpush1.bf16.msra.mxu1 %v2931_v59  ;;  %v2970_v58 = vld [vmem:[#allocation5 + $0x3a0] ss:$8 sps:$4 sm:$0xff]   ;;  %v2996_v28 = vld [vmem:[#allocation5 + $0x3e4] ss:$8 sps:$4 sm:$0xff]   ;;  %v342_v20 = vld [vmem:[%s3537_s25 + $0x150] sm:$0xff] }
  0xe9   : > { %1374 = vmatprep.mubr.bf16.mxu1 %v477_v60  ;;  %1636 = vmatprep.mubr.bf16.mxu0 %v481_v62  ;;  %v396_v59 = vld [vmem:[%s3537_s25 + $0x300] sm:$0xff] }
  0xea   : > { %1714 = vmatpush1.bf16.msra.mxu0 %v2934_v61  ;;  %1453 = vmatprep.subr.bf16.mxu1 %v2939_v2  ;;  %v404_v60 = vld [vmem:[%s3537_s25 + $0x340] sm:$0xff]  ;;  %v421_v2 = vld [vmem:[%s3537_s25 + $0x3c8] sm:$0xff] }
  0xeb   : > { %1715 = vmatprep.subr.bf16.mxu0 %v2942_v3  ;;  %v400_v61 = vld [vmem:[%s3537_s25 + $0x320] sm:$0xff]  ;;  %v2973_v3 = vld [vmem:[#allocation5 + $0x1b0] ss:$8 sps:$4 sm:$0xff]   ;;  %v500_v9 = vpack.c.bf16 %v404_v60, %v396_v59  ;;  %v509_v11 = vpack.c.bf16 %v421_v2, %v413_v1 }
  0xec   : > { %1454 = vmatpush1.bf16.msra.mxu1 %v2937_v5  ;;  %v408_v62 = vld [vmem:[%s3537_s25 + $0x360] sm:$0xff]  ;;  %v425_v5 = vld [vmem:[%s3537_s25 + $0x3e8] sm:$0xff]  ;;  %v302_v59 = vld [vmem:[%s3537_s25 + $0x10] sm:$0xff] }
  0xed   : > { %1455 = vmatprep.subr.bf16.mxu1 %v2945_v7  ;;  %v2981_v7 = vld [vmem:[#allocation5 + $0x1c4] ss:$8 sps:$4 sm:$0xff]   ;;  %v504_v10 = vpack.c.bf16 %v408_v62, %v400_v61  ;;  %v310_v60 = vld [vmem:[%s3537_s25 + $0x50] sm:$0xff]  ;;  %v323_v1 = vld [vmem:[%s3537_s25 + $0xb8] sm:$0xff] }
  0xee   : > { %1716 = vmatpush1.bf16.msra.mxu0 %v2940_v6  ;;  %v2976_v6 = vld [vmem:[#allocation5 + $0x3b0] ss:$8 sps:$4 sm:$0xff]   ;;  %v432_v39 = vld [vmem:[%s3537_s25 + $0x420] sm:$0xff] }
  0xef   : > { %1717 = vmatprep.subr.bf16.mxu0 %v2948_v12  ;;  %1375 = vmatmul.mubr.bf16.gmra.mrb[12].mxu1 %v476_v13  ;;  %v513_v12 = vpack.c.bf16 %v425_v5, %v417_v4  ;;  %v2979_v13 = vld [vmem:[#allocation5 + $0x1c0] ss:$8 sps:$4 sm:$0xff]   ;;  %v306_v61 = vld [vmem:[%s3537_s25 + $0x30] sm:$0xff]  ;;  %v331_v2 = vld [vmem:[%s3537_s25 + $0xf8] sm:$0xff] }
  0xf0   : > { %1637 = vmatmul.mubr.bf16.gmra.mrb[12].mxu0 %v480_v14  ;;  %1384 = vmatprep.mubr.bf16.mxu1 %v485_v16  ;;  %v2982_v14 = vld [vmem:[#allocation5 + $0x3c0] ss:$8 sps:$4 sm:$0xff]   ;;  %v2987_v16 = vld [vmem:[#allocation5 + $0x1d4] ss:$8 sps:$4 sm:$0xff]  }
  0xf1   : > { %1456 = vmatpush1.bf16.msra.mxu1 %v2943_v15  ;;  %1646 = vmatprep.mubr.bf16.mxu0 %v489_v17  ;;  %v412_v15 = vld [vmem:[%s3537_s25 + $0x380] sm:$0xff]  ;;  %v2990_v17 = vld [vmem:[#allocation5 + $0x3d4] ss:$8 sps:$4 sm:$0xff]  }
  0xf2   : > { %1718 = vmatpush1.bf16.msra.mxu0 %v2946_v18  ;;  %1457 = vmatprep.subr.bf16.mxu1 %v2951_v23  ;;  %v420_v18 = vld [vmem:[%s3537_s25 + $0x3c0] sm:$0xff]  ;;  %v433_v23 = vld [vmem:[%s3537_s25 + $0x428] sm:$0xff]  ;;  %v314_v62 = vld [vmem:[%s3537_s25 + $0x70] sm:$0xff] }
  0xf3   : > { %1719 = vmatprep.subr.bf16.mxu0 %v2954_v24  ;;  %v441_v24 = vld [vmem:[%s3537_s25 + $0x468] sm:$0xff]  ;;  %v508_v29 = vpack.c.bf16 %v420_v18, %v412_v15  ;;  %v440_v40 = vld [vmem:[%s3537_s25 + $0x460] sm:$0xff]  ;;  %v458_v4 = vpack.c.bf16 %v314_v62, %v306_v61  ;;  %v403_v61 = vld [vmem:[%s3537_s25 + $0x338] sm:$0xff] }
  0xf4   : > { %v520_v46 = vpack.c.bf16 %v440_v40, %v432_v39  ;;  %v444_v49 = vld [vmem:[%s3537_s25 + $0x480] sm:$0xff]  ;;  %v411_v62 = vld [vmem:[%s3537_s25 + $0x378] sm:$0xff] }
  0xf5   : > { %1458 = vmatpush1.bf16.msra.mxu1 %v2949_v25  ;;  %v2985_v25 = vld [vmem:[#allocation5 + $0x1d0] ss:$8 sps:$4 sm:$0xff]  }
  0xf6   : > { %1720 = vmatpush1.bf16.msra.mxu0 %v2952_v26  ;;  %1459 = vmatprep.subr.bf16.mxu1 %v2957_v31  ;;  %v2988_v26 = vld [vmem:[#allocation5 + $0x3d0] ss:$8 sps:$4 sm:$0xff]   ;;  %v517_v31 = vpack.c.bf16 %v437_v22, %v429_v21 }
  0xf7   : > { %1721 = vmatprep.subr.bf16.mxu0 %v2960_v32  ;;  %1385 = vmatmul.mubr.bf16.gmra.mrb[16].mxu1 %v484_v33  ;;  %v521_v32 = vpack.c.bf16 %v441_v24, %v433_v23  ;;  %v2991_v33 = vld [vmem:[#allocation5 + $0x1e0] ss:$8 sps:$4 sm:$0xff]   ;;  %v338_v21 = vld [vmem:[%s3537_s25 + $0x130] sm:$0xff]  ;;  %v351_v23 = vld [vmem:[%s3537_s25 + $0x198] sm:$0xff] }
  0xf8   : > { %1647 = vmatmul.mubr.bf16.gmra.mrb[16].mxu0 %v488_v34  ;;  %1394 = vmatprep.mubr.bf16.mxu1 %v493_v35  ;;  %v2994_v34 = vld [vmem:[#allocation5 + $0x3e0] ss:$8 sps:$4 sm:$0xff]   ;;  %v2999_v35 = vld [vmem:[#allocation5 + $0x1f4] ss:$8 sps:$4 sm:$0xff]  }
  0xf9   : > { %1656 = vmatprep.mubr.bf16.mxu0 %v497_v36  ;;  %1460 = vmatpush1.bf16.msra.mxu1 %v2955_v37  ;;  %v3002_v36 = vld [vmem:[#allocation5 + $0x3f4] ss:$8 sps:$4 sm:$0xff]   ;;  %v428_v37 = vld [vmem:[%s3537_s25 + $0x400] sm:$0xff] }
  0xfa   : > { %1722 = vmatpush1.bf16.msra.mxu0 %v2958_v38  ;;  %1461 = vmatprep.subr.bf16.mxu1 %v2963_v42  ;;  %v436_v38 = vld [vmem:[%s3537_s25 + $0x440] sm:$0xff]  ;;  %v449_v42 = vld [vmem:[%s3537_s25 + $0x4a8] sm:$0xff]  ;;  %v346_v22 = vld [vmem:[%s3537_s25 + $0x170] sm:$0xff] }
  0xfb   : > { %1723 = vmatprep.subr.bf16.mxu0 %v2966_v43  ;;  %v2997_v43 = vld [vmem:[#allocation5 + $0x1f0] ss:$8 sps:$4 sm:$0xff]   ;;  %v529_v48 = vpack.c.bf16 %v449_v42, %v449_v42 }
  0xfc   : > { %v359_v24 = vld [vmem:[%s3537_s25 + $0x1d8] sm:$0xff] }
  0xfd   : > { %1462 = vmatpush1.bf16.msra.mxu1 %v2961_v45  ;;  %v516_v45 = vpack.c.bf16 %v436_v38, %v428_v37  ;;  %v371_v37 = vld [vmem:[%s3537_s25 + $0x238] sm:$0xff] }
  0xfe   : > { %1724 = vmatpush1.bf16.msra.mxu0 %v2964_v50  ;;  %1463 = vmatprep.subr.bf16.mxu1 %v2969_v51  ;;  %v448_v50 = vld [vmem:[%s3537_s25 + $0x4a0] sm:$0xff]  ;;  %v303_v51 = vld [vmem:[%s3537_s25 + $0x18] sm:$0xff] }
  0xff   : > { %1725 = vmatprep.subr.bf16.mxu0 %v2972_v52  ;;  %1395 = vmatmul.mubr.bf16.gmra.mrb[20].mxu1 %v492_v53  ;;  %v311_v52 = vld [vmem:[%s3537_s25 + $0x58] sm:$0xff] }
 0x100   : > { %1657 = vmatmul.mubr.bf16.gmra.mrb[20].mxu0 %v496_v54  ;;  %1404 = vmatprep.mubr.bf16.mxu1 %v501_v55  ;;  %v307_v53 = vld [vmem:[%s3537_s25 + $0x38] sm:$0xff]  ;;  %v524_v55 = vpack.c.bf16 %v444_v49, %v444_v49 }
 0x101   : > { %1666 = vmatprep.mubr.bf16.mxu0 %v505_v56  ;;  %1464 = vmatpush1.bf16.msra.mxu1 %v2967_v57  ;;  %v315_v54 = vld [vmem:[%s3537_s25 + $0x78] sm:$0xff]  ;;  %v528_v56 = vpack.c.bf16 %v448_v50, %v448_v50  ;;  %v455_v57 = vpack.c.bf16 %v311_v52, %v303_v51 }
 0x102   : > { %1726 = vmatpush1.bf16.msra.mxu0 %v2970_v58  ;;  %1465 = vmatprep.subr.bf16.mxu1 %v2975_v63  ;;  %v459_v58 = vpack.c.bf16 %v315_v54, %v307_v53  ;;  %v319_v63 = vld [vmem:[%s3537_s25 + $0x98] sm:$0xff] }
 0x103   : > { %1727 = vmatprep.subr.bf16.mxu0 %v2978_v0  ;;  %v327_v0 = vld [vmem:[%s3537_s25 + $0xd8] sm:$0xff] }
 0x104   : > { %v463_v5 = vpack.c.bf16 %v327_v0, %v319_v63  ;;  %v379_v38 = vld [vmem:[%s3537_s25 + $0x278] sm:$0xff] }
 0x105   : > { %1466 = vmatpush1.bf16.msra.mxu1 %v2973_v3  ;;  %v454_v3 = vpack.c.bf16 %v310_v60, %v302_v59  ;;  %v491_v42 = vpack.c.bf16 %v379_v38, %v371_v37  ;;  %v387_v49 = vld [vmem:[%s3537_s25 + $0x2b8] sm:$0xff]  ;;  %v446_v37 = vld [vmem:[%s3537_s25 + $0x490] sm:$0xff] }
 0x106   : > { %1728 = vmatpush1.bf16.msra.mxu0 %v2976_v6  ;;  %1467 = vmatprep.subr.bf16.mxu1 %v2981_v7  ;;  %v467_v6 = vpack.c.bf16 %v331_v2, %v323_v1  ;;  %v318_v7 = vld [vmem:[%s3537_s25 + $0x90] sm:$0xff]  ;;  %v395_v50 = vld [vmem:[%s3537_s25 + $0x2f8] sm:$0xff]  ;;  %v507_v2 = vpack.c.bf16 %v411_v62, %v403_v61 }
 0x107   : > { %1729 = vmatprep.subr.bf16.mxu0 %v2984_v8  ;;  %1405 = vmatmul.mubr.bf16.gmra.mrb[24].mxu1 %v500_v9  ;;  %v326_v8 = vld [vmem:[%s3537_s25 + $0xd0] sm:$0xff]  ;;  %v499_v54 = vpack.c.bf16 %v395_v50, %v387_v49  ;;  %v399_v59 = vld [vmem:[%s3537_s25 + $0x318] sm:$0xff] }
 0x108   : > { %1667 = vmatmul.mubr.bf16.gmra.mrb[24].mxu0 %v504_v10  ;;  %1414 = vmatprep.mubr.bf16.mxu1 %v509_v11  ;;  %v322_v9 = vld [vmem:[%s3537_s25 + $0xb0] sm:$0xff]  ;;  %v335_v11 = vld [vmem:[%s3537_s25 + $0x118] sm:$0xff]  ;;  %v462_v15 = vpack.c.bf16 %v326_v8, %v318_v7 }
 0x109   : > { %1676 = vmatprep.mubr.bf16.mxu0 %v513_v12  ;;  %1468 = vmatpush1.bf16.msra.mxu1 %v2979_v13  ;;  %v330_v10 = vld [vmem:[%s3537_s25 + $0xf0] sm:$0xff]  ;;  %v343_v12 = vld [vmem:[%s3537_s25 + $0x158] sm:$0xff] }
 0x10a   : > { %1730 = vmatpush1.bf16.msra.mxu0 %v2982_v14  ;;  %1469 = vmatprep.subr.bf16.mxu1 %v2987_v16  ;;  %v339_v13 = vld [vmem:[%s3537_s25 + $0x138] sm:$0xff]  ;;  %v466_v16 = vpack.c.bf16 %v330_v10, %v322_v9  ;;  %v450_v38 = vld [vmem:[%s3537_s25 + $0x4b0] sm:$0xff] }
 0x10b   : > { %1731 = vmatprep.subr.bf16.mxu0 %v2990_v17  ;;  %v347_v14 = vld [vmem:[%s3537_s25 + $0x178] sm:$0xff]  ;;  %v471_v17 = vpack.c.bf16 %v343_v12, %v335_v11 }
 0x10c   : > { %v475_v18 = vpack.c.bf16 %v347_v14, %v339_v13  ;;  %v407_v60 = vld [vmem:[%s3537_s25 + $0x358] sm:$0xff] }
 0x10d   : > { %1470 = vmatpush1.bf16.msra.mxu1 %v2985_v25  ;;  %v355_v25 = vld [vmem:[%s3537_s25 + $0x1b8] sm:$0xff]  ;;  %v503_v1 = vpack.c.bf16 %v407_v60, %v399_v59 }
 0x10e   : > { %1732 = vmatpush1.bf16.msra.mxu0 %v2988_v26  ;;  %1471 = vmatprep.subr.bf16.mxu1 %v2993_v27  ;;  %v363_v26 = vld [vmem:[%s3537_s25 + $0x1f8] sm:$0xff]  ;;  %v470_v27 = vpack.c.bf16 %v342_v20, %v334_v19 }
 0x10f   : > { %1733 = vmatprep.subr.bf16.mxu0 %v2996_v28  ;;  %1415 = vmatmul.mubr.bf16.gmra.mrb[28].mxu1 %v508_v29  ;;  %v474_v28 = vpack.c.bf16 %v346_v22, %v338_v21  ;;  %v479_v29 = vpack.c.bf16 %v359_v24, %v351_v23  ;;  %v415_v7 = vld [vmem:[%s3537_s25 + $0x398] sm:$0xff] }
 0x110   : > { %1677 = vmatmul.mubr.bf16.gmra.mrb[28].mxu0 %v512_v30  ;;  %1424 = vmatprep.mubr.bf16.mxu1 %v517_v31  ;;  %v483_v30 = vpack.c.bf16 %v363_v26, %v355_v25  ;;  %v350_v31 = vld [vmem:[%s3537_s25 + $0x190] sm:$0xff]  ;;  %v423_v8 = vld [vmem:[%s3537_s25 + $0x3d8] sm:$0xff] }
 0x111   : > { %1686 = vmatprep.mubr.bf16.mxu0 %v521_v32  ;;  %1472 = vmatpush1.bf16.msra.mxu1 %v2991_v33  ;;  %v358_v32 = vld [vmem:[%s3537_s25 + $0x1d0] sm:$0xff]  ;;  %v419_v9 = vld [vmem:[%s3537_s25 + $0x3b8] sm:$0xff]  ;;  %v511_v13 = vpack.c.bf16 %v423_v8, %v415_v7 }
 0x112   : > { %1734 = vmatpush1.bf16.msra.mxu0 %v2994_v34  ;;  %1473 = vmatprep.subr.bf16.mxu1 %v2999_v35  ;;  %v354_v33 = vld [vmem:[%s3537_s25 + $0x1b0] sm:$0xff]  ;;  %v367_v35 = vld [vmem:[%s3537_s25 + $0x218] sm:$0xff]  ;;  %v478_v39 = vpack.c.bf16 %v358_v32, %v350_v31 }
 0x113   : > { %1735 = vmatprep.subr.bf16.mxu0 %v3002_v36  ;;  %v362_v34 = vld [vmem:[%s3537_s25 + $0x1f0] sm:$0xff]  ;;  %v375_v36 = vld [vmem:[%s3537_s25 + $0x258] sm:$0xff] }
 0x114   : > { %v482_v40 = vpack.c.bf16 %v362_v34, %v354_v33  ;;  %v487_v41 = vpack.c.bf16 %v375_v36, %v367_v35  ;;  %v427_v10 = vld [vmem:[%s3537_s25 + $0x3f8] sm:$0xff] }
 0x115   : > { %1474 = vmatpush1.bf16.msra.mxu1 %v2997_v43  ;;  %v366_v43 = vld [vmem:[%s3537_s25 + $0x210] sm:$0xff]  ;;  %v515_v14 = vpack.c.bf16 %v427_v10, %v419_v9  ;;  %v431_v19 = vld [vmem:[%s3537_s25 + $0x418] sm:$0xff] }
 0x116   : > { %1736 = vmatpush1.bf16.msra.mxu0 %v3000_v44  ;;  %v374_v44 = vld [vmem:[%s3537_s25 + $0x250] sm:$0xff]  ;;  %v439_v20 = vld [vmem:[%s3537_s25 + $0x458] sm:$0xff] }
 0x117   : > { %1425 = vmatmul.mubr.bf16.gmra.mrb[32].mxu1 %v516_v45  ;;  %v370_v45 = vld [vmem:[%s3537_s25 + $0x230] sm:$0xff]  ;;  %v486_v51 = vpack.c.bf16 %v374_v44, %v366_v43  ;;  %v435_v21 = vld [vmem:[%s3537_s25 + $0x438] sm:$0xff]  ;;  %v519_v25 = vpack.c.bf16 %v439_v20, %v431_v19  ;;  %v660_v44 = vld [vmem:[#allocation7] sm:$0x3] }
 0x118   : > { %1687 = vmatmul.mubr.bf16.gmra.mrb[32].mxu0 %v520_v46  ;;  %1434 = vmatprep.mubr.bf16.mxu1 %v525_v47  ;;  %v378_v46 = vld [vmem:[%s3537_s25 + $0x270] sm:$0xff]  ;;  %v383_v47 = vld [vmem:[%s3537_s25 + $0x298] sm:$0xff] }
 0x119   : > { %1696 = vmatprep.mubr.bf16.mxu0 %v529_v48  ;;  %v391_v48 = vld [vmem:[%s3537_s25 + $0x2d8] sm:$0xff]  ;;  %v490_v52 = vpack.c.bf16 %v378_v46, %v370_v45 }
 0x11a   : > { %v495_v53 = vpack.c.bf16 %v391_v48, %v383_v47  ;;  %v443_v22 = vld [vmem:[%s3537_s25 + $0x478] sm:$0xff] }
 0x11b   : > { %v523_v26 = vpack.c.bf16 %v443_v22, %v435_v21  ;;  %v447_v31 = vld [vmem:[%s3537_s25 + $0x498] sm:$0xff] }
 0x11c   : > { %v451_v32 = vld [vmem:[%s3537_s25 + $0x4b8] sm:$0xff]  ;;  %v527_v35 = vpack.c.bf16 %v447_v31, %v447_v31 }
 0x11d   : > { %v531_v36 = vpack.c.bf16 %v451_v32, %v451_v32 }
 0x11f   : > { %1435 = vmatmul.mubr.bf16.gmra.mrb[36].mxu1 %v524_v55  ;;  %v382_v55 = vld [vmem:[%s3537_s25 + $0x290] sm:$0xff] }
 0x120   : > { %1697 = vmatmul.mubr.bf16.gmra.mrb[36].mxu0 %v528_v56  ;;  %1475 = vmatprep.mubr.bf16.mxu1 %v455_v57  ;;  %v390_v56 = vld [vmem:[%s3537_s25 + $0x2d0] sm:$0xff] }
 0x121   : > { %1737 = vmatprep.mubr.bf16.mxu0 %v459_v58  ;;  %v386_v57 = vld [vmem:[%s3537_s25 + $0x2b0] sm:$0xff]  ;;  %v494_v63 = vpack.c.bf16 %v390_v56, %v382_v55 }
 0x122   : > { %v394_v58 = vld [vmem:[%s3537_s25 + $0x2f0] sm:$0xff] }
 0x123   : > { %v498_v0 = vpack.c.bf16 %v394_v58, %v386_v57 }
 0x127   : > { %1476 = vmatmul.mubr.bf16.vlgmr.msra.gmra.mrb[0].mxu1 %v454_v3  ;;  %v398_v3 = vld [vmem:[%s3537_s25 + $0x310] sm:$0xff] }
 0x128   : > { %1738 = vmatmul.mubr.bf16.vlgmr.msra.gmra.mrb[0].mxu0 %v458_v4  ;;  %1485 = vmatprep.mubr.bf16.mxu1 %v463_v5  ;;  %v406_v4 = vld [vmem:[%s3537_s25 + $0x350] sm:$0xff] }
 0x129   : > { %1747 = vmatprep.mubr.bf16.mxu0 %v467_v6  ;;  %v402_v5 = vld [vmem:[%s3537_s25 + $0x330] sm:$0xff]  ;;  %v502_v11 = vpack.c.bf16 %v406_v4, %v398_v3 }
 0x12a   : > { %v410_v6 = vld [vmem:[%s3537_s25 + $0x370] sm:$0xff] }
 0x12b   : > { %v506_v12 = vpack.c.bf16 %v410_v6, %v402_v5  ;;  %v1874_v5 = vld [vmem:[#allocation8] sm:$0x3] }
 0x12f   : > { %1486 = vmatmul.mubr.bf16.gmra.mrb[4].mxu1 %v462_v15  ;;  %v414_v15 = vld [vmem:[%s3537_s25 + $0x390] sm:$0xff] }
 0x130   : > { %1748 = vmatmul.mubr.bf16.gmra.mrb[4].mxu0 %v466_v16  ;;  %1495 = vmatprep.mubr.bf16.mxu1 %v471_v17  ;;  %v422_v16 = vld [vmem:[%s3537_s25 + $0x3d0] sm:$0xff] }
 0x131   : > { %1757 = vmatprep.mubr.bf16.mxu0 %v475_v18  ;;  %v418_v17 = vld [vmem:[%s3537_s25 + $0x3b0] sm:$0xff]  ;;  %v510_v23 = vpack.c.bf16 %v422_v16, %v414_v15 }
 0x132   : > { %v426_v18 = vld [vmem:[%s3537_s25 + $0x3f0] sm:$0xff] }
 0x133   : > { %v514_v24 = vpack.c.bf16 %v426_v18, %v418_v17 }
 0x137   : > { %1496 = vmatmul.mubr.bf16.gmra.mrb[8].mxu1 %v470_v27  ;;  %v430_v27 = vld [vmem:[%s3537_s25 + $0x410] sm:$0xff] }
 0x138   : > { %1758 = vmatmul.mubr.bf16.gmra.mrb[8].mxu0 %v474_v28  ;;  %1505 = vmatprep.mubr.bf16.mxu1 %v479_v29  ;;  %v438_v28 = vld [vmem:[%s3537_s25 + $0x450] sm:$0xff] }
 0x139   : > { %1767 = vmatprep.mubr.bf16.mxu0 %v483_v30  ;;  %v434_v29 = vld [vmem:[%s3537_s25 + $0x430] sm:$0xff]  ;;  %v518_v33 = vpack.c.bf16 %v438_v28, %v430_v27 }
 0x13a   : > { %v442_v30 = vld [vmem:[%s3537_s25 + $0x470] sm:$0xff] }
 0x13b   : > { %v522_v34 = vpack.c.bf16 %v442_v30, %v434_v29 }
 0x13f   : > { %1506 = vmatmul.mubr.bf16.gmra.mrb[12].mxu1 %v478_v39  ;;  %v526_v39 = vpack.c.bf16 %v446_v37, %v446_v37 }
 0x140   : > { %1768 = vmatmul.mubr.bf16.gmra.mrb[12].mxu0 %v482_v40  ;;  %1515 = vmatprep.mubr.bf16.mxu1 %v487_v41  ;;  %v530_v40 = vpack.c.bf16 %v450_v38, %v450_v38  ;;  %v662_v41 = vlaneseq }
 0x141   : > { %1777 = vmatprep.mubr.bf16.mxu0 %v491_v42 }
 0x142   : > { %v663_v42 = vshrl.u32 %v662_v41, 7 }
 0x144   : > { %v664_v43 = vsub.s32 0, %v663_v42  ;;  %v668_v45 = vsub.s32 1, %v663_v42 }
 0x146   : > { %v3703_v46 = vrot.slane %v660_v44, %v664_v43  ;;  %v3705_v47 = vrot.slane %v660_v44, %v668_v45  ;;  %v3715_v15 = vrot.slane %v1874_v5, %v664_v43  ;;  %v3717_v17 = vrot.slane %v1874_v5, %v668_v45 }
 0x147   : > { %1516 = vmatmul.mubr.bf16.gmra.mrb[16].mxu1 %v486_v51 }
 0x148   : > { %1778 = vmatmul.mubr.bf16.gmra.mrb[16].mxu0 %v490_v52  ;;  %1525 = vmatprep.mubr.bf16.mxu1 %v495_v53 }
 0x149   : > { %1787 = vmatprep.mubr.bf16.mxu0 %v499_v54 }
 0x14f   : > { %1526 = vmatmul.mubr.bf16.gmra.mrb[20].mxu1 %v494_v63 }
 0x150   : > { %1788 = vmatmul.mubr.bf16.gmra.mrb[20].mxu0 %v498_v0  ;;  %1535 = vmatprep.mubr.bf16.mxu1 %v503_v1 }
 0x151   : > { %1797 = vmatprep.mubr.bf16.mxu0 %v507_v2 }
 0x157   : > { %1536 = vmatmul.mubr.bf16.gmra.mrb[24].mxu1 %v502_v11 }
 0x158   : > { %1798 = vmatmul.mubr.bf16.gmra.mrb[24].mxu0 %v506_v12  ;;  %1545 = vmatprep.mubr.bf16.mxu1 %v511_v13 }
 0x159   : > { %1807 = vmatprep.mubr.bf16.mxu0 %v515_v14 }
 0x15f   : > { %1546 = vmatmul.mubr.bf16.gmra.mrb[28].mxu1 %v510_v23 }
 0x160   : > { %1808 = vmatmul.mubr.bf16.gmra.mrb[28].mxu0 %v514_v24  ;;  %1555 = vmatprep.mubr.bf16.mxu1 %v519_v25 }
 0x161   : > { %1817 = vmatprep.mubr.bf16.mxu0 %v523_v26 }
 0x167   : > { %1556 = vmatmul.mubr.bf16.gmra.mrb[32].mxu1 %v518_v33 }
 0x168   : > { %1818 = vmatmul.mubr.bf16.gmra.mrb[32].mxu0 %v522_v34  ;;  %1565 = vmatprep.mubr.bf16.mxu1 %v527_v35 }
 0x169   : > { %1827 = vmatprep.mubr.bf16.mxu0 %v531_v36 }
 0x16f   : > { %1566 = vmatmul.mubr.bf16.gmra.mrb[36].mxu1 %v526_v39 }
 0x170   : > { %1828 = vmatmul.mubr.bf16.gmra.mrb[36].mxu0 %v530_v40 }
 0x1fa   : > { %v1477_v48 = vpop.f32.mrb[0].mxu1 }
 0x1fb   : > { %v1739_v49 = vpop.f32.mrb[0].mxu0  ;;  %v2519_v50 = vadd.f32 %v1477_v48, %v3703_v46  ;;  %v1479_v51 = vpop.f32.mrb[1].mxu1 }
 0x1fc   : > { %v1741_v52 = vpop.f32.mrb[1].mxu0  ;;  %v2521_v53 = vadd.f32 %v1479_v51, %v3705_v47  ;;  %v1481_v54 = vpop.f32.mrb[2].mxu1 }
 0x1fd   : > { %v1743_v55 = vpop.f32.mrb[2].mxu0  ;;  %v2520_v56 = vadd.f32 %v2519_v50, %v1739_v49  ;;  %v2523_v57 = vadd.f32 %v1481_v54, %v3703_v46  ;;  %v1483_v58 = vpop.f32.mrb[3].mxu1 }
 0x1fe   : > { %v1745_v59 = vpop.f32.mrb[3].mxu0  ;;  %v2522_v60 = vadd.f32 %v2521_v53, %v1741_v52  ;;  %v2525_v61 = vadd.f32 %v1483_v58, %v3705_v47 }
 0x1ff   : > { %3003 = vtanh.f32 %v2520_v56  ;;  %v2524_v62 = vadd.f32 %v2523_v57, %v1743_v55 }
 0x200   : > { %3005 = vtanh.f32 %v2522_v60  ;;  %v2526_v63 = vadd.f32 %v2525_v61, %v1745_v59 }
 0x201   : > { %3007 = vtanh.f32 %v2524_v62 }
 0x202   : > { %3009 = vtanh.f32 %v2526_v63  ;;  %v1487_v0 = vpop.f32.mrb[4].mxu1 }
 0x203   : > { %v1749_v1 = vpop.f32.mrb[4].mxu0  ;;  %v2527_v2 = vadd.f32 %v1487_v0, %v3703_v46  ;;  %v1489_v3 = vpop.f32.mrb[5].mxu1 }
 0x204   : > { %v1751_v4 = vpop.f32.mrb[5].mxu0  ;;  %v2529_v6 = vadd.f32 %v1489_v3, %v3705_v47  ;;  %v1491_v7 = vpop.f32.mrb[6].mxu1 }
 0x205   : > { %v1753_v8 = vpop.f32.mrb[6].mxu0  ;;  %v2528_v9 = vadd.f32 %v2527_v2, %v1749_v1  ;;  %v2531_v10 = vadd.f32 %v1491_v7, %v3703_v46  ;;  %v1493_v11 = vpop.f32.mrb[7].mxu1 }
 0x206   : > { %v1755_v12 = vpop.f32.mrb[7].mxu0  ;;  %v2530_v13 = vadd.f32 %v2529_v6, %v1751_v4  ;;  %v2533_v14 = vadd.f32 %v1493_v11, %v3705_v47 }
 0x207   : > { %3011 = vtanh.f32 %v2528_v9  ;;  %v2532_v16 = vadd.f32 %v2531_v10, %v1753_v8 }
 0x208   : > { %3013 = vtanh.f32 %v2530_v13  ;;  %v2534_v18 = vadd.f32 %v2533_v14, %v1755_v12 }
 0x209   : > { %v3004_v19 = vpop.eup %3003  ;;  %3015 = vtanh.f32 %v2532_v16 }
 0x20a   : > { %v3006_v20 = vpop.eup %3005  ;;  %3017 = vtanh.f32 %v2534_v18  ;;  %v1497_v21 = vpop.f32.mrb[8].mxu1  ;;  %v1886_v23 = vmul.f32 %v3004_v19, %v3715_v15 }
 0x20b   : > { %v1759_v22 = vpop.f32.mrb[8].mxu0  ;;  %v3008_v24 = vpop.eup %3007  ;;  %v2535_v25 = vadd.f32 %v1497_v21, %v3703_v46  ;;  %v1887_v28 = vmul.f32 %v3006_v20, %v3717_v17 }
 0x20c   : > { %v1499_v26 = vpop.f32.mrb[9].mxu1  ;;  %v1761_v27 = vpop.f32.mrb[9].mxu0  ;;  %v1888_v33 = vmul.f32 %v3008_v24, %v3715_v15 }
 0x20d   : > { %v3010_v29 = vpop.eup %3009  ;;  %v2537_v30 = vadd.f32 %v1499_v26, %v3705_v47  ;;  %v1501_v31 = vpop.f32.mrb[10].mxu1  ;;  %v2536_v34 = vadd.f32 %v2535_v25, %v1759_v22  ;;  %v1924_v38 = vadd.f32 %v1887_v28, %v1886_v23 }
 0x20e   : > { %v1763_v32 = vpop.f32.mrb[10].mxu0  ;;  %v2539_v35 = vadd.f32 %v1501_v31, %v3703_v46  ;;  %v1503_v36 = vpop.f32.mrb[11].mxu1  ;;  %v1889_v39 = vmul.f32 %v3010_v29, %v3717_v17 }
 0x20f   : > { %v1765_v37 = vpop.f32.mrb[11].mxu0  ;;  %v2538_v40 = vadd.f32 %v2537_v30, %v1761_v27  ;;  %v2541_v41 = vadd.f32 %v1503_v36, %v3705_v47  ;;  %3019 = vtanh.f32 %v2536_v34  ;;  %1925 = vadd.xlane.f32.xlu0 %v1924_v38 }
 0x210   : > { %v2540_v42 = vadd.f32 %v2539_v35, %v1763_v32  ;;  %v1927_v43 = vadd.f32 %v1889_v39, %v1888_v33 }
 0x211   : > { %3021 = vtanh.f32 %v2538_v40  ;;  %v2542_v44 = vadd.f32 %v2541_v41, %v1765_v37  ;;  %v3012_v45 = vpop.eup %3011 }
 0x212   : > { %3023 = vtanh.f32 %v2540_v42  ;;  %v3014_v48 = vpop.eup %3013  ;;  %v1507_v49 = vpop.f32.mrb[12].mxu1  ;;  %v1890_v51 = vmul.f32 %v3012_v45, %v3715_v15 }
 0x213   : > { %3025 = vtanh.f32 %v2542_v44  ;;  %v1769_v50 = vpop.f32.mrb[12].mxu0  ;;  %v3016_v52 = vpop.eup %3015  ;;  %v2543_v53 = vadd.f32 %v1507_v49, %v3703_v46  ;;  %1928 = vadd.xlane.f32.xlu0 %v1927_v43  ;;  %v1891_v56 = vmul.f32 %v3014_v48, %v3717_v17 }
 0x214   : > { %v1771_v54 = vpop.f32.mrb[13].mxu0  ;;  %v1509_v55 = vpop.f32.mrb[13].mxu1  ;;  %v1892_v61 = vmul.f32 %v3016_v52, %v3715_v15 }
 0x215   : > { %v3018_v57 = vpop.eup %3017  ;;  %v2545_v58 = vadd.f32 %v1509_v55, %v3705_v47  ;;  %v1511_v59 = vpop.f32.mrb[14].mxu1  ;;  %v2544_v62 = vadd.f32 %v2543_v53, %v1769_v50  ;;  %v1930_v2 = vadd.f32 %v1891_v56, %v1890_v51 }
 0x216   : > { %v1773_v60 = vpop.f32.mrb[14].mxu0  ;;  %v2547_v63 = vadd.f32 %v1511_v59, %v3703_v46  ;;  %v1513_v0 = vpop.f32.mrb[15].mxu1  ;;  %v1893_v3 = vmul.f32 %v3018_v57, %v3717_v17 }
 0x217   : > { %v1775_v1 = vpop.f32.mrb[15].mxu0  ;;  %v2546_v4 = vadd.f32 %v2545_v58, %v1771_v54  ;;  %v2549_v5 = vadd.f32 %v1513_v0, %v3705_v47  ;;  %3027 = vtanh.f32 %v2544_v62  ;;  %1931 = vadd.xlane.f32.xlu1 %v1930_v2 }
 0x218   : > { %v2548_v6 = vadd.f32 %v2547_v63, %v1773_v60  ;;  %v1933_v7 = vadd.f32 %v1893_v3, %v1892_v61 }
 0x219   : > { %3029 = vtanh.f32 %v2546_v4  ;;  %v2550_v8 = vadd.f32 %v2549_v5, %v1775_v1  ;;  %v3020_v9 = vpop.eup %3019 }
 0x21a   : > { %3031 = vtanh.f32 %v2548_v6  ;;  %v1517_v11 = vpop.f32.mrb[16].mxu1  ;;  %v1894_v13 = vmul.f32 %v3020_v9, %v3715_v15 }
 0x21b   : > { %v3022_v10 = vpop.eup %3021  ;;  %3033 = vtanh.f32 %v2550_v8  ;;  %v1779_v12 = vpop.f32.mrb[16].mxu0  ;;  %v2551_v16 = vadd.f32 %v1517_v11, %v3703_v46  ;;  %1934 = vadd.xlane.f32.xlu1 %v1933_v7 }
 0x21c   : > { %v3024_v14 = vpop.eup %3023  ;;  %v1781_v18 = vpop.f32.mrb[17].mxu0  ;;  %v1895_v20 = vmul.f32 %v3022_v10, %v3717_v17 }
 0x21d   : > { %v1519_v19 = vpop.f32.mrb[17].mxu1  ;;  %v3026_v21 = vpop.eup %3025  ;;  %v1896_v25 = vmul.f32 %v3024_v14, %v3715_v15  ;;  %v2552_v26 = vadd.f32 %v2551_v16, %v1779_v12 }
 0x21e   : > { %v2553_v22 = vadd.f32 %v1519_v19, %v3705_v47  ;;  %v1521_v23 = vpop.f32.mrb[18].mxu1  ;;  %v1783_v24 = vpop.f32.mrb[18].mxu0  ;;  %v1936_v30 = vadd.f32 %v1895_v20, %v1894_v13  ;;  %v1897_v31 = vmul.f32 %v3026_v21, %v3717_v17 }
 0x21f   : > { %v2555_v27 = vadd.f32 %v1521_v23, %v3703_v46  ;;  %v1523_v28 = vpop.f32.mrb[19].mxu1  ;;  %v1785_v29 = vpop.f32.mrb[19].mxu0  ;;  %3035 = vtanh.f32 %v2552_v26 }
 0x220   : > { %v2554_v32 = vadd.f32 %v2553_v22, %v1781_v18  ;;  %v2557_v33 = vadd.f32 %v1523_v28, %v3705_v47  ;;  %1937 = vadd.xlane.f32.xlu0 %v1936_v30  ;;  %v1939_v35 = vadd.f32 %v1897_v31, %v1896_v25 }
 0x221   : > { %v2556_v34 = vadd.f32 %v2555_v27, %v1783_v24  ;;  %v3028_v37 = vpop.eup %3027 }
 0x222   : > { %3037 = vtanh.f32 %v2554_v32  ;;  %v2558_v36 = vadd.f32 %v2557_v33, %v1785_v29  ;;  %1940 = vadd.xlane.f32.xlu1 %v1939_v35  ;;  %v1527_v39 = vpop.f32.mrb[20].mxu1  ;;  %v1898_v41 = vmul.f32 %v3028_v37, %v3715_v15 }
 0x223   : > { %3039 = vtanh.f32 %v2556_v34  ;;  %v3030_v38 = vpop.eup %3029  ;;  %v1789_v40 = vpop.f32.mrb[20].mxu0  ;;  %v2559_v43 = vadd.f32 %v1527_v39, %v3703_v46 }
 0x224   : > { %3041 = vtanh.f32 %v2558_v36  ;;  %v3032_v42 = vpop.eup %3031  ;;  %v1529_v44 = vpop.f32.mrb[21].mxu1  ;;  %v1899_v48 = vmul.f32 %v3030_v38, %v3717_v17 }
 0x225   : > { %v1791_v45 = vpop.f32.mrb[21].mxu0  ;;  %v3034_v49 = vpop.eup %3033  ;;  %v2561_v50 = vadd.f32 %v1529_v44, %v3705_v47  ;;  %v1900_v53 = vmul.f32 %v3032_v42, %v3715_v15  ;;  %v2560_v54 = vadd.f32 %v2559_v43, %v1789_v40 }
 0x226   : > { %v1531_v51 = vpop.f32.mrb[22].mxu1  ;;  %v1793_v52 = vpop.f32.mrb[22].mxu0  ;;  %v1942_v58 = vadd.f32 %v1899_v48, %v1898_v41  ;;  %v1901_v59 = vmul.f32 %v3034_v49, %v3717_v17 }
 0x227   : > { %v2563_v55 = vadd.f32 %v1531_v51, %v3703_v46  ;;  %v1533_v56 = vpop.f32.mrb[23].mxu1  ;;  %v1795_v57 = vpop.f32.mrb[23].mxu0  ;;  %v2562_v60 = vadd.f32 %v2561_v50, %v1791_v45  ;;  %3043 = vtanh.f32 %v2560_v54 }
 0x228   : > { %v2565_v61 = vadd.f32 %v1533_v56, %v3705_v47  ;;  %1943 = vadd.xlane.f32.xlu0 %v1942_v58  ;;  %v1945_v63 = vadd.f32 %v1901_v59, %v1900_v53 }
 0x229   : > { %v2564_v62 = vadd.f32 %v2563_v55, %v1793_v52  ;;  %3045 = vtanh.f32 %v2562_v60  ;;  %v3036_v1 = vpop.eup %3035 }
 0x22a   : > { %v2566_v0 = vadd.f32 %v2565_v61, %v1795_v57  ;;  %1946 = vadd.xlane.f32.xlu1 %v1945_v63  ;;  %v1537_v3 = vpop.f32.mrb[24].mxu1  ;;  %v1902_v5 = vmul.f32 %v3036_v1, %v3715_v15 }
 0x22b   : > { %3047 = vtanh.f32 %v2564_v62  ;;  %v1799_v4 = vpop.f32.mrb[24].mxu0  ;;  %v2567_v7 = vadd.f32 %v1537_v3, %v3703_v46  ;;  %v1539_v8 = vpop.f32.mrb[25].mxu1 }
 0x22c   : > { %v3038_v2 = vpop.eup %3037  ;;  %3049 = vtanh.f32 %v2566_v0  ;;  %v1801_v9 = vpop.f32.mrb[25].mxu0  ;;  %v2569_v12 = vadd.f32 %v1539_v8, %v3705_v47 }
 0x22d   : > { %v3040_v6 = vpop.eup %3039  ;;  %v1903_v10 = vmul.f32 %v3038_v2, %v3717_v17  ;;  %v1541_v13 = vpop.f32.mrb[26].mxu1  ;;  %v2568_v18 = vadd.f32 %v2567_v7, %v1799_v4 }
 0x22e   : > { %v3042_v11 = vpop.eup %3041  ;;  %v1803_v14 = vpop.f32.mrb[26].mxu0  ;;  %v1904_v16 = vmul.f32 %v3040_v6, %v3715_v15  ;;  %v2571_v19 = vadd.f32 %v1541_v13, %v3703_v46  ;;  %v2570_v24 = vadd.f32 %v2569_v12, %v1801_v9 }
 0x22f   : > { %v1543_v20 = vpop.f32.mrb[27].mxu1  ;;  %v1805_v21 = vpop.f32.mrb[27].mxu0  ;;  %v1948_v22 = vadd.f32 %v1903_v10, %v1902_v5  ;;  %v1905_v23 = vmul.f32 %v3042_v11, %v3717_v17  ;;  %3051 = vtanh.f32 %v2568_v18 }
 0x230   : > { %v2573_v25 = vadd.f32 %v1543_v20, %v3705_v47  ;;  %v2572_v26 = vadd.f32 %v2571_v19, %v1803_v14  ;;  %3053 = vtanh.f32 %v2570_v24 }
 0x231   : > { %1949 = vadd.xlane.f32.xlu0 %v1948_v22  ;;  %v1951_v27 = vadd.f32 %v1905_v23, %v1904_v16  ;;  %v3044_v29 = vpop.eup %3043 }
 0x232   : > { %v2574_v28 = vadd.f32 %v2573_v25, %v1805_v21  ;;  %3055 = vtanh.f32 %v2572_v26  ;;  %v1547_v31 = vpop.f32.mrb[28].mxu1  ;;  %v1906_v33 = vmul.f32 %v3044_v29, %v3715_v15 }
 0x233   : > { %1952 = vadd.xlane.f32.xlu1 %v1951_v27  ;;  %v3046_v30 = vpop.eup %3045  ;;  %v1809_v32 = vpop.f32.mrb[28].mxu0  ;;  %v2575_v35 = vadd.f32 %v1547_v31, %v3703_v46 }
 0x234   : > { %3057 = vtanh.f32 %v2574_v28  ;;  %v1549_v36 = vpop.f32.mrb[29].mxu1  ;;  %v1811_v37 = vpop.f32.mrb[29].mxu0  ;;  %v1907_v38 = vmul.f32 %v3046_v30, %v3717_v17 }
 0x235   : > { %v3048_v34 = vpop.eup %3047  ;;  %v2577_v40 = vadd.f32 %v1549_v36, %v3705_v47  ;;  %v1551_v41 = vpop.f32.mrb[30].mxu1  ;;  %v2576_v44 = vadd.f32 %v2575_v35, %v1809_v32 }
 0x236   : > { %v3050_v39 = vpop.eup %3049  ;;  %v1813_v42 = vpop.f32.mrb[30].mxu0  ;;  %v1908_v43 = vmul.f32 %v3048_v34, %v3715_v15  ;;  %v2579_v45 = vadd.f32 %v1551_v41, %v3703_v46  ;;  %v1954_v50 = vadd.f32 %v1907_v38, %v1906_v33 }
 0x237   : > { %v1553_v48 = vpop.f32.mrb[31].mxu1  ;;  %v1815_v49 = vpop.f32.mrb[31].mxu0  ;;  %v1909_v51 = vmul.f32 %v3050_v39, %v3717_v17  ;;  %v2578_v52 = vadd.f32 %v2577_v40, %v1811_v37  ;;  %3059 = vtanh.f32 %v2576_v44 }
 0x238   : > { %v2581_v53 = vadd.f32 %v1553_v48, %v3705_v47  ;;  %v2580_v54 = vadd.f32 %v2579_v45, %v1813_v42  ;;  %1955 = vadd.xlane.f32.xlu0 %v1954_v50 }
 0x239   : > { %v1957_v55 = vadd.f32 %v1909_v51, %v1908_v43  ;;  %3061 = vtanh.f32 %v2578_v52  ;;  %v3052_v57 = vpop.eup %3051 }
 0x23a   : > { %v2582_v56 = vadd.f32 %v2581_v53, %v1815_v49  ;;  %3063 = vtanh.f32 %v2580_v54  ;;  %v3054_v58 = vpop.eup %3053  ;;  %v1557_v59 = vpop.f32.mrb[32].mxu1  ;;  %v1910_v61 = vmul.f32 %v3052_v57, %v3715_v15 }
 0x23b   : > { %1958 = vadd.xlane.f32.xlu1 %v1957_v55  ;;  %v1819_v60 = vpop.f32.mrb[32].mxu0  ;;  %v2583_v63 = vadd.f32 %v1557_v59, %v3703_v46  ;;  %v1559_v0 = vpop.f32.mrb[33].mxu1  ;;  %v1911_v2 = vmul.f32 %v3054_v58, %v3717_v17  ;;  %v2501_v58 = vld [vmem:[#allocation2] ss:$0 sm:$0xff] }
 0x23c   : > { %3065 = vtanh.f32 %v2582_v56  ;;  %v3056_v62 = vpop.eup %3055  ;;  %v1821_v1 = vpop.f32.mrb[33].mxu0  ;;  %v2585_v4 = vadd.f32 %v1559_v0, %v3705_v47 }
 0x23d   : > { %v1561_v5 = vpop.f32.mrb[34].mxu1  ;;  %v1823_v6 = vpop.f32.mrb[34].mxu0  ;;  %v1912_v7 = vmul.f32 %v3056_v62, %v3715_v15  ;;  %v2584_v8 = vadd.f32 %v2583_v63, %v1819_v60  ;;  %v1960_v12 = vadd.f32 %v1911_v2, %v1910_v61 }
 0x23e   : > { %v3058_v3 = vpop.eup %3057  ;;  %v2587_v9 = vadd.f32 %v1561_v5, %v3703_v46  ;;  %v1563_v10 = vpop.f32.mrb[35].mxu1  ;;  %v2586_v14 = vadd.f32 %v2585_v4, %v1821_v1 }
 0x23f   : > { %v1825_v11 = vpop.f32.mrb[35].mxu0  ;;  %v1913_v13 = vmul.f32 %v3058_v3, %v3717_v17  ;;  %v2589_v16 = vadd.f32 %v1563_v10, %v3705_v47  ;;  %3067 = vtanh.f32 %v2584_v8  ;;  %1961 = vadd.xlane.f32.xlu0 %v1960_v12 }
 0x240   : > { %v2588_v18 = vadd.f32 %v2587_v9, %v1823_v6  ;;  %3069 = vtanh.f32 %v2586_v14 }
 0x241   : > { %v1963_v19 = vadd.f32 %v1913_v13, %v1912_v7  ;;  %v2590_v20 = vadd.f32 %v2589_v16, %v1825_v11  ;;  %v3060_v21 = vpop.eup %3059 }
 0x242   : > { %3071 = vtanh.f32 %v2588_v18  ;;  %v1567_v23 = vpop.f32.mrb[36].mxu1  ;;  %v1914_v25 = vmul.f32 %v3060_v21, %v3715_v15 }
 0x243   : > { %1964 = vadd.xlane.f32.xlu1 %v1963_v19  ;;  %v3062_v22 = vpop.eup %3061  ;;  %3073 = vtanh.f32 %v2590_v20  ;;  %v1829_v24 = vpop.f32.mrb[36].mxu0  ;;  %v2591_v27 = vadd.f32 %v1567_v23, %v3703_v46 }
 0x244   : > { %v3064_v26 = vpop.eup %3063  ;;  %v1569_v28 = vpop.f32.mrb[37].mxu1  ;;  %v1915_v30 = vmul.f32 %v3062_v22, %v3717_v17 }
 0x245   : > { %v1831_v29 = vpop.f32.mrb[37].mxu0  ;;  %v2593_v32 = vadd.f32 %v1569_v28, %v3705_v47  ;;  %v1571_v33 = vpop.f32.mrb[38].mxu1  ;;  %v1916_v35 = vmul.f32 %v3064_v26, %v3715_v15  ;;  %v2592_v36 = vadd.f32 %v2591_v27, %v1829_v24 }
 0x246   : > { %v3066_v31 = vpop.eup %3065  ;;  %v1833_v34 = vpop.f32.mrb[38].mxu0  ;;  %v1966_v39 = vadd.f32 %v1915_v30, %v1914_v25 }
 0x247   : > { %v1572_v37 = vpop.f32.mrb[39].mxu1  ;;  %v1834_v38 = vpop.f32.mrb[39].mxu0  ;;  %v1917_v40 = vmul.f32 %v3066_v31, %v3717_v17  ;;  %v2594_v41 = vadd.f32 %v2593_v32, %v1831_v29  ;;  %3075 = vtanh.f32 %v2592_v36 }
 0x248   : > { %1967 = vadd.xlane.f32.xlu0 %v1966_v39 }
 0x249   : > { %v1969_v46 = vadd.f32 %v1917_v40, %v1916_v35  ;;  %3077 = vtanh.f32 %v2594_v41  ;;  %v3068_v42 = vpop.eup %3067 }
 0x24a   : > { %v3070_v43 = vpop.eup %3069  ;;  %v1918_v47 = vmul.f32 %v3068_v42, %v3715_v15 }
 0x24b   : > { %1970 = vadd.xlane.f32.xlu1 %v1969_v46  ;;  %v1919_v45 = vmul.f32 %v3070_v43, %v3717_v17 }
 0x24c   : > { %v3072_v44 = vpop.eup %3071 }
 0x24d   : > { %v3074_v48 = vpop.eup %3073  ;;  %v1920_v49 = vmul.f32 %v3072_v44, %v3715_v15  ;;  %v1972_v50 = vadd.f32 %v1919_v45, %v1918_v47 }
 0x24e   : > { %v1921_v51 = vmul.f32 %v3074_v48, %v3717_v17 }
 0x24f   : > { %1973 = vadd.xlane.f32.xlu0 %v1972_v50 }
 0x250   : > { %v1975_v52 = vadd.f32 %v1921_v51, %v1920_v49 }
 0x251   : > { %v3076_v53 = vpop.eup %3075 }
 0x252   : > { %1976 = vadd.xlane.f32.xlu1 %v1975_v52  ;;  %v1922_v55 = vmul.f32 %v3076_v53, %v3715_v15 }
 0x253   : > { %v3078_v54 = vpop.eup %3077 }
 0x254   : > { %v1923_v56 = vmul.f32 %v3078_v54, %v3717_v17 }
 0x256   : > { %v1978_v57 = vadd.f32 %v1923_v56, %v1922_v55 }
 0x258   : > { %1979 = vadd.xlane.f32.xlu0 %v1978_v57 }
 0x29c   : > { %v1926_v59 = vpop.xlane.xlu0 %1925 }
 0x29d   : > { %v1988_v60 = vadd.f32 %v2501_v58, %v1926_v59 }
 0x29f   : > { %2008 = vst.msk [vmem:[%s3788_s6] sm:$0xff] %vm2007_vm0, %v1988_v60 }
 0x2a0   : > { %v1929_v15 = vpop.xlane.xlu0 %1928 }
 0x2a1   : > { %v1989_v61 = vadd.f32 %v2501_v58, %v1929_v15 }
 0x2a3   : > { %2009 = vst.msk [vmem:[%s3788_s6 + $0x8] sm:$0xff] %vm2007_vm0, %v1989_v61 }
 0x2a4   : > { %v1932_v17 = vpop.xlane.xlu1 %1931 }
 0x2a5   : > { %v1990_v62 = vadd.f32 %v2501_v58, %v1932_v17 }
 0x2a7   : > { %2010 = vst.msk [vmem:[%s3788_s6 + $0x10] sm:$0xff] %vm2007_vm0, %v1990_v62 }
 0x2a8   : > { %v1935_v63 = vpop.xlane.xlu1 %1934 }
 0x2a9   : > { %v1991_v0 = vadd.f32 %v2501_v58, %v1935_v63 }
 0x2ab   : > { %2011 = vst.msk [vmem:[%s3788_s6 + $0x18] sm:$0xff] %vm2007_vm0, %v1991_v0 }
 0x2ad   : > { %v1938_v1 = vpop.xlane.xlu0 %1937 }
 0x2ae   : > { %v1992_v2 = vadd.f32 %v2501_v58, %v1938_v1 }
 0x2af   : > { %v1941_v3 = vpop.xlane.xlu1 %1940 }
 0x2b0   : > { %2012 = vst.msk [vmem:[%s3788_s6 + $0x20] sm:$0xff] %vm2007_vm0, %v1992_v2  ;;  %v1993_v4 = vadd.f32 %v2501_v58, %v1941_v3 }
 0x2b2   : > { %2013 = vst.msk [vmem:[%s3788_s6 + $0x28] sm:$0xff] %vm2007_vm0, %v1993_v4 }
 0x2b5   : > { %v1944_v5 = vpop.xlane.xlu0 %1943 }
 0x2b6   : > { %v1994_v6 = vadd.f32 %v2501_v58, %v1944_v5 }
 0x2b7   : > { %v1947_v7 = vpop.xlane.xlu1 %1946 }
 0x2b8   : > { %2014 = vst.msk [vmem:[%s3788_s6 + $0x30] sm:$0xff] %vm2007_vm0, %v1994_v6  ;;  %v1995_v8 = vadd.f32 %v2501_v58, %v1947_v7 }
 0x2ba   : > { %2015 = vst.msk [vmem:[%s3788_s6 + $0x38] sm:$0xff] %vm2007_vm0, %v1995_v8 }
 0x2be   : > { %v1950_v9 = vpop.xlane.xlu0 %1949 }
 0x2bf   : > { %v1996_v10 = vadd.f32 %v2501_v58, %v1950_v9 }
 0x2c0   : > { %v1953_v11 = vpop.xlane.xlu1 %1952 }
 0x2c1   : > { %2016 = vst.msk [vmem:[%s3788_s6 + $0x40] sm:$0xff] %vm2007_vm0, %v1996_v10  ;;  %v1997_v12 = vadd.f32 %v2501_v58, %v1953_v11 }
 0x2c3   : > { %2017 = vst.msk [vmem:[%s3788_s6 + $0x48] sm:$0xff] %vm2007_vm0, %v1997_v12 }
 0x2c5   : > { %v1956_v13 = vpop.xlane.xlu0 %1955 }
 0x2c6   : > { %v1998_v14 = vadd.f32 %v2501_v58, %v1956_v13 }
 0x2c8   : > { %v1959_v16 = vpop.xlane.xlu1 %1958  ;;  %2018 = vst.msk [vmem:[%s3788_s6 + $0x50] sm:$0xff] %vm2007_vm0, %v1998_v14 }
 0x2c9   : > { %v1999_v18 = vadd.f32 %v2501_v58, %v1959_v16 }
 0x2cb   : > { %2019 = vst.msk [vmem:[%s3788_s6 + $0x58] sm:$0xff] %vm2007_vm0, %v1999_v18 }
 0x2cc   : > { %v1962_v19 = vpop.xlane.xlu0 %1961 }
 0x2cd   : > { %v2000_v20 = vadd.f32 %v2501_v58, %v1962_v19 }
 0x2cf   : > { %2020 = vst.msk [vmem:[%s3788_s6 + $0x60] sm:$0xff] %vm2007_vm0, %v2000_v20 }
 0x2d0   : > { %v1965_v21 = vpop.xlane.xlu1 %1964 }
 0x2d1   : > { %v2001_v22 = vadd.f32 %v2501_v58, %v1965_v21 }
 0x2d3   : > { %2021 = vst.msk [vmem:[%s3788_s6 + $0x68] sm:$0xff] %vm2007_vm0, %v2001_v22 }
 0x2d5   : > { %v1968_v23 = vpop.xlane.xlu0 %1967 }
 0x2d6   : > { %v2002_v24 = vadd.f32 %v2501_v58, %v1968_v23 }
 0x2d8   : > { %v1971_v25 = vpop.xlane.xlu1 %1970  ;;  %2022 = vst.msk [vmem:[%s3788_s6 + $0x70] sm:$0xff] %vm2007_vm0, %v2002_v24 }
 0x2d9   : > { %v2003_v26 = vadd.f32 %v2501_v58, %v1971_v25 }
 0x2db   : > { %2023 = vst.msk [vmem:[%s3788_s6 + $0x78] sm:$0xff] %vm2007_vm0, %v2003_v26 }
 0x2dc   : > { %v1974_v27 = vpop.xlane.xlu0 %1973 }
 0x2dd   : > { %v2004_v28 = vadd.f32 %v2501_v58, %v1974_v27 }
 0x2df   : > { %v1977_v29 = vpop.xlane.xlu1 %1976  ;;  %2024 = vst.msk [vmem:[%s3788_s6 + $0x80] sm:$0xff] %vm2007_vm0, %v2004_v28 }
 0x2e0   : > { %v2005_v30 = vadd.f32 %v2501_v58, %v1977_v29 }
 0x2e2   : > { %2025 = vst.msk [vmem:[%s3788_s6 + $0x88] sm:$0xff] %vm2007_vm0, %v2005_v30  ;;  %2033 = sbr.rel (!%p3954_p8) target bundleno = 808 (0x328), region = 60 }
 0x2e5   : > { %v1980_v31 = vpop.xlane.xlu0 %1979 }
 0x2e6   : > { %v2006_v32 = vadd.f32 %v2501_v58, %v1980_v31 }
 0x2e8   : > { %2026 = vst.msk [vmem:[%s3788_s6 + $0x90] sm:$0xff] %vm2007_vm0, %v2006_v32 }
 0x2e9   : > { %s3965_s15 = smov (!%p2036_p5, %s2035_s15), 19 }
 0x2ea   : > { %s2502_s26 = sshll.u32 %s3965_s15, 7 }
 0x2eb   : > { %p2505_p10 = scmp.eq.s32.totalorder %s2502_s26, 0 }
 0x2ec   : > { %3079 = sdivrem.u32 (!%p2505_p10), %s3965_s15, 19 }
 0x2ed   : > { %2044 = sbr.rel (%p2505_p10) target bundleno = 808 (0x328), region = 64 }
 0x2f5   : > { %s3841_s30 = spop.drf %3079 }
 0x2f6   : > { %p2506_p3 = scmp.le.s32.totalorder %s3841_s30, 0 }
 0x2f7   : > { %s3955_s4 = smov (!%p2506_p3), %s3835_s23  ;;  %s3956_s19 = smov (!%p2506_p3), %s3788_s6 }
 0x2f8   : > { %2282 = sbr.rel (%p2506_p3) target bundleno = 779 (0x30b), region = 146  ;;  %s3850_s8 = smov (!%p2506_p3), 0  }
 0x2f9   : > { %s3852_s7 = smov (!%p2506_p3), 0  }
 0x2ff LB: >> { %v2144_v33 = vld [vmem:[%s3277_s19] sm:$0xff]  ;;  %v2146_v34 = vld [vmem:[%s3277_s19 + $0x8] sm:$0xff]  ;;  %v2148_v35 = vld [vmem:[%s3277_s19 + $0x10] sm:$0xff]  ;;  %s2182_s10 = sadd.s32 1, %s3281_s8  ;;  %s2138_s7 = sadd.s32 1, %s3285_s7   ;;  %s3285_s7 = sphi %s3852_s7, %s2138_s7   ;;  %s3281_s8 = sphi %s3850_s8, %s3957_s8   ;;  %s3277_s19 = sphi %s3956_s19, %s2187_s19   ;;  %s3273_s4 = sphi %s3955_s4, %s2188_s4  }
 0x300   : >> { %2145 = vst [vmem:[%s3273_s4] sm:$0xff] %v2144_v33  ;;  %2147 = vst [vmem:[%s3273_s4 + $0x8] sm:$0xff] %v2146_v34  ;;  %v2150_v36 = vld [vmem:[%s3277_s19 + $0x18] sm:$0xff]  ;;  %v2152_v37 = vld [vmem:[%s3277_s19 + $0x20] sm:$0xff]  ;;  %p2183_p11 = scmp.ge.s32.totalorder %s2182_s10, %s3841_s30  ;;  %p2137_p13 = scmp.ge.s32.totalorder %s2138_s7, %s3841_s30 }
 0x301   : >> { %2149 = vst [vmem:[%s3273_s4 + $0x10] sm:$0xff] %v2148_v35  ;;  %v2154_v38 = vld [vmem:[%s3277_s19 + $0x28] sm:$0xff]  ;;  %2151 = vst [vmem:[%s3273_s4 + $0x18] sm:$0xff] %v2150_v36  ;;  %v2156_v39 = vld [vmem:[%s3277_s19 + $0x30] sm:$0xff] }
 0x302   : >> { %2153 = vst [vmem:[%s3273_s4 + $0x20] sm:$0xff] %v2152_v37  ;;  %2155 = vst [vmem:[%s3273_s4 + $0x28] sm:$0xff] %v2154_v38  ;;  %v2158_v40 = vld [vmem:[%s3277_s19 + $0x38] sm:$0xff]  ;;  %v2160_v41 = vld [vmem:[%s3277_s19 + $0x40] sm:$0xff]  ;;  %s3967_s10 = smov (%p2183_p11, %s2182_s10), 0 }
 0x303   : >> { %2157 = vst [vmem:[%s3273_s4 + $0x30] sm:$0xff] %v2156_v39  ;;  %2159 = vst [vmem:[%s3273_s4 + $0x38] sm:$0xff] %v2158_v40  ;;  %v2162_v46 = vld [vmem:[%s3277_s19 + $0x48] sm:$0xff]  ;;  %v2164_v42 = vld [vmem:[%s3277_s19 + $0x50] sm:$0xff]  ;;  %s2185_s9 = smul.u32 152, %s3967_s10  ;;  %s3957_s8 = smov %s3967_s10 }
 0x304   : >> { %2161 = vst [vmem:[%s3273_s4 + $0x40] sm:$0xff] %v2160_v41  ;;  %v2166_v43 = vld [vmem:[%s3277_s19 + $0x58] sm:$0xff]  ;;  %2163 = vst [vmem:[%s3273_s4 + $0x48] sm:$0xff] %v2162_v46  ;;  %v2168_v47 = vld [vmem:[%s3277_s19 + $0x60] sm:$0xff]  ;;  %2140 = sbr.rel (!%p2137_p13) target bundleno = 767 (0x2ff), region = 152 }
 0x305   : >> { %2165 = vst [vmem:[%s3273_s4 + $0x50] sm:$0xff] %v2164_v42  ;;  %2167 = vst [vmem:[%s3273_s4 + $0x58] sm:$0xff] %v2166_v43  ;;  %v2170_v44 = vld [vmem:[%s3277_s19 + $0x68] sm:$0xff]  ;;  %v2172_v45 = vld [vmem:[%s3277_s19 + $0x70] sm:$0xff] }
 0x306   : >> { %2169 = vst [vmem:[%s3273_s4 + $0x60] sm:$0xff] %v2168_v47  ;;  %2171 = vst [vmem:[%s3273_s4 + $0x68] sm:$0xff] %v2170_v44  ;;  %v2174_v48 = vld [vmem:[%s3277_s19 + $0x78] sm:$0xff]  ;;  %v2176_v49 = vld [vmem:[%s3277_s19 + $0x80] sm:$0xff] }
 0x307   : >> { %2173 = vst [vmem:[%s3273_s4 + $0x70] sm:$0xff] %v2172_v45  ;;  %v2178_v50 = vld [vmem:[%s3277_s19 + $0x88] sm:$0xff]  ;;  %2175 = vst [vmem:[%s3273_s4 + $0x78] sm:$0xff] %v2174_v48  ;;  %v2180_v51 = vld [vmem:[%s3277_s19 + $0x90] sm:$0xff]  ;;  %s2187_s19 = scalar_lea.vmem %s3788_s6, %s2185_s9 [#allocation10]  }
 0x308   : >> { %2177 = vst [vmem:[%s3273_s4 + $0x80] sm:$0xff] %v2176_v49  ;;  %2179 = vst [vmem:[%s3273_s4 + $0x88] sm:$0xff] %v2178_v50 }
 0x309   : >> { %2181 = vst [vmem:[%s3273_s4 + $0x90] sm:$0xff] %v2180_v51  ;;  %s2188_s4 = scalar_lea.vmem %s3835_s23, %s2185_s9  }
 0x30b PF: > { %3081 = sdivrem.u32 %s3965_s15, 19 }
 0x30c   : > { %s2507_s13 = smul.u32 152, %s3841_s30 }
 0x30e   : > { %s2193_s28 = scalar_lea.vmem %s3788_s6, %s2507_s13 [#allocation10]   ;;  %s2195_s16 = scalar_lea.vmem %s3835_s23, %s2507_s13  }
 0x314   : > { %s3082_s17 = spop.drf %3081 }
 0x315   : > { %p2509_p1 = scmp.le.s32.totalorder %s3082_s17, 0 }
 0x316   : > { %s3287_s20 = smov (!%p2509_p1), %s2195_s16   ;;  %s3291_s25 = smov (!%p2509_p1), %s2193_s28  }
 0x317   : > { %2296 = sbr.rel (%p2509_p1) target bundleno = 808 (0x328), region = 157  ;;  %s3295_s29 = smov (!%p2509_p1), 0  }
 0x318   : > { %s3299_s12 = smov (!%p2509_p1), 0  }
 0x31e LB: >> { %v2205_v52 = vld [vmem:[%s3293_s25] sm:$0xff]  ;;  %s2207_s14 = sadd.s32 1, %s3297_s29  ;;  %s2199_s12 = sadd.s32 1, %s3301_s12   ;;  %s3301_s12 = sphi %s3299_s12, %s2199_s12   ;;  %s3297_s29 = sphi %s3295_s29, %s3296_s29   ;;  %s3293_s25 = sphi %s3291_s25, %s2212_s25   ;;  %s3289_s20 = sphi %s3287_s20, %s2213_s20  }
 0x31f   : >> { %2206 = vst [vmem:[%s3289_s20] sm:$0xff] %v2205_v52  ;;  %p2208_p7 = scmp.ge.s32.totalorder %s2207_s14, %s3082_s17  ;;  %p2198_p6 = scmp.ge.s32.totalorder %s2199_s12, %s3082_s17 }
 0x321   : >> { %s3969_s14 = smov (%p2208_p7, %s2207_s14), 0  ;;  %2201 = sbr.rel (!%p2198_p6) target bundleno = 798 (0x31e), region = 163 }
 0x322   : >> { %s2510_s6 = sshll.u32 %s3969_s14, 3  ;;  %s3296_s29 = smov %s3969_s14  }
 0x323   : >> { %s2212_s25 = scalar_lea.vmem %s2193_s28, %s2510_s6 [#allocation10]   ;;  %s2213_s20 = scalar_lea.vmem %s2195_s16, %s2510_s6  }
 0x328 PF: > { %p19_p9 = scmp.ge.s32.totalorder %s3366_s24, 6   ;;  %s3958_s20 = smov %s3261_s21 }
 0x329   : > { %s3959_s21 = smov %s3265_s22  ;;  %s3960_s22 = smov %s3376_s27 }
 0x32a   : > { %s3961_s23 = smov %s3366_s24  ;;  %21 = sbr.rel (!%p19_p9) target bundleno = 8 (0x8), region = 174 }
 0x331   :  { %2229 = vsyncpa [#allocation4], 1 }
 0x332   :  { %2231 = vsyncpa [#allocation4 + $0x1], 1 }
 0x333   :  { %2232 = vsyncpa [#allocation6], 1 }
 0x334   :  { %2233 = vsyncpa [#allocation9], 1 }

</bundles_post_ra>
